<compile_context>
chip_gen: v7x
topology: tpu7x:2x2x1
jax: 0.10.0
libtpu: 0.0.40
codegen_flags: <defaults>
</compile_context>

<pallas_src>
import math

import jax
import jax.numpy as jnp
from jax.experimental import pallas as pl
from jax.experimental.pallas import tpu as pltpu

# ----------------------------- configuration --------------------------------
SEQ_LEN = 16
LABEL_LEN = 8
PRED_LEN = 8
D_MODEL = 32
N_HEADS = 4
HEAD_DIM = D_MODEL // N_HEADS
D_FF = 64
E_LAYERS = 2
ENC_IN = 4          # N (number of target series)
MARK_DIM = 4        # time-feature channels in x_mark_enc
N_TOKENS = ENC_IN + MARK_DIM
BATCH = 2
EPS = 1e-5

F32 = jnp.float32


# ------------------------------ small helpers --------------------------------
def _ln(x, gamma, beta):
    """LayerNorm over the last axis (PyTorch nn.LayerNorm semantics, eps=1e-5)."""
    mu = jnp.mean(x, axis=-1, keepdims=True)
    xc = x - mu
    var = jnp.mean(xc * xc, axis=-1, keepdims=True)
    return xc * jax.lax.rsqrt(var + EPS) * gamma + beta


def _dot(a, b):
    return jnp.dot(a, b, preferred_element_type=jnp.float32)


# ------------------------------ fused kernel ---------------------------------
def _fused_forward_kernel(x_ref, mark_ref,
                          wemb_ref, bemb_ref,
                          wqkv_ref, bqkv_ref, wo_ref, bo_ref,
                          g1_ref, be1_ref, w1_ref, b1_ref,
                          w2_ref, b2_ref, g2_ref, be2_ref,
                          gN_ref, bN_ref, wp_ref, bp_ref,
                          o_ref):
    # ---- per-series normalization; stats never leave VMEM -------------------
    x = x_ref[0]                                             # (L, N)
    mean = jnp.mean(x, axis=0, keepdims=True)                # (1, N)
    xc = x - mean
    var = jnp.mean(xc * xc, axis=0, keepdims=True)           # ddof=0 (unbiased=False)
    std = jnp.sqrt(var + EPS)                                # (1, N)
    xn = xc / std                                            # (L, N)

    # ---- inverted embedding: transpose folded into the contraction ----------
    wemb = wemb_ref[...]                                     # (L, D)
    tok_x = jax.lax.dot_general(xn, wemb, (((0,), (0,)), ((), ())),
                                preferred_element_type=jnp.float32)      # (N, D)
    tok_m = jax.lax.dot_general(mark_ref[0], wemb, (((0,), (0,)), ((), ())),
                                preferred_element_type=jnp.float32)      # (M, D)
    h = jnp.concatenate([tok_x, tok_m], axis=0) + bemb_ref[...]          # (V, D)

    # ---- E_LAYERS encoder layers, unrolled ----------------------------------
    scale = 1.0 / math.sqrt(HEAD_DIM)
    for l in range(E_LAYERS):
        qkv = _dot(h, wqkv_ref[l]) + bqkv_ref[l]             # (V, 3D) fused QKV
        ctx_heads = []
        for hh in range(N_HEADS):
            lo = hh * HEAD_DIM
            qh = qkv[:, lo:lo + HEAD_DIM]
            kh = qkv[:, D_MODEL + lo:D_MODEL + lo + HEAD_DIM]
            vh = qkv[:, 2 * D_MODEL + lo:2 * D_MODEL + lo + HEAD_DIM]
            s = jax.lax.dot_general(qh, kh, (((1,), (1,)), ((), ())),
                                    preferred_element_type=jnp.float32) * scale
            s = s - jnp.max(s, axis=-1, keepdims=True)
            p = jnp.exp(s)
            p = p / jnp.sum(p, axis=-1, keepdims=True)
            ctx_heads.append(_dot(p, vh))                    # (V, HEAD_DIM)
        ctx = jnp.concatenate(ctx_heads, axis=1)             # (V, D)
        attn_out = _dot(ctx, wo_ref[l]) + bo_ref[l]          # single Wo matmul

        x1 = h + attn_out                                    # residual (dropout = id)
        xn1 = _ln(x1, g1_ref[l], be1_ref[l])                 # norm1
        y = jnp.maximum(_dot(xn1, w1_ref[l]) + b1_ref[l], 0.0)   # conv1 (1x1) + relu
        y = _dot(y, w2_ref[l]) + b2_ref[l]                   # conv2 (1x1)
        h = _ln(xn1 + y, g2_ref[l], be2_ref[l])              # norm2

    # ---- final norm, projection (directly in (pred_len, enc_in) layout) -----
    hn = _ln(h, gN_ref[...], bN_ref[...])                    # (V, D)
    proj_t = jax.lax.dot_general(wp_ref[...], hn[:ENC_IN, :],
                                 (((0,), (1,)), ((), ())),
                                 preferred_element_type=jnp.float32)     # (P, N)
    proj_t = proj_t + bp_ref[...]                            # bp is (P, 1)
    o_ref[0] = proj_t * std + mean                           # de-normalize


# ------------------------------ wrapper --------------------------------------
def pallas_model_forward(params, x_enc, x_mark_enc, x_dec, x_mark_dec):
    # x_dec / x_mark_dec are unused by the iTransformer forecast path.
    del x_dec, x_mark_dec
    x_enc = x_enc[:, :SEQ_LEN, :]
    x_mark_enc = x_mark_enc[:, :SEQ_LEN, :]
    B = x_enc.shape[0]

    def wf(shape):
        return pl.BlockSpec(shape, lambda b, _n=len(shape): (0,) * _n)

    return pl.pallas_call(
        _fused_forward_kernel,
        out_shape=jax.ShapeDtypeStruct((B, PRED_LEN, ENC_IN), F32),
        grid=(B,),
        in_specs=[
            pl.BlockSpec((1, SEQ_LEN, ENC_IN), lambda b: (b, 0, 0)),
            pl.BlockSpec((1, SEQ_LEN, MARK_DIM), lambda b: (b, 0, 0)),
            wf((SEQ_LEN, D_MODEL)), wf((1, D_MODEL)),
            wf((E_LAYERS, D_MODEL, 3 * D_MODEL)), wf((E_LAYERS, 1, 3 * D_MODEL)),
            wf((E_LAYERS, D_MODEL, D_MODEL)), wf((E_LAYERS, 1, D_MODEL)),
            wf((E_LAYERS, 1, D_MODEL)), wf((E_LAYERS, 1, D_MODEL)),
            wf((E_LAYERS, D_MODEL, D_FF)), wf((E_LAYERS, 1, D_FF)),
            wf((E_LAYERS, D_FF, D_MODEL)), wf((E_LAYERS, 1, D_MODEL)),
            wf((E_LAYERS, 1, D_MODEL)), wf((E_LAYERS, 1, D_MODEL)),
            wf((1, D_MODEL)), wf((1, D_MODEL)),
            wf((D_MODEL, PRED_LEN)), wf((PRED_LEN, 1)),
        ],
        out_specs=pl.BlockSpec((1, PRED_LEN, ENC_IN), lambda b: (b, 0, 0)),
        compiler_params=pltpu.CompilerParams(dimension_semantics=("parallel",)),
    )(x_enc, x_mark_enc,
      params["w_emb"], params["b_emb"],
      params["wqkv"], params["bqkv"], params["wo"], params["bo"],
      params["g1"], params["be1"], params["w1"], params["b1"],
      params["w2"], params["b2"], params["g2"], params["be2"],
      params["gN"], params["bN"], params["wp"], params["bp_col"])


# --------------------------- pure-JAX reference -------------------------------
def _ref_layer(h, params, l):
    B, V, D = h.shape
    qkv = h @ params["wqkv"][l] + params["bqkv"][l]
    q, k, v = jnp.split(qkv, 3, axis=-1)
    q = q.reshape(B, V, N_HEADS, HEAD_DIM).transpose(0, 2, 1, 3)
    k = k.reshape(B, V, N_HEADS, HEAD_DIM).transpose(0, 2, 1, 3)
    v = v.reshape(B, V, N_HEADS, HEAD_DIM).transpose(0, 2, 1, 3)
    s = jnp.einsum("bhqd,bhkd->bhqk", q, k) / math.sqrt(HEAD_DIM)
    a = jax.nn.softmax(s, axis=-1)
    ctx = jnp.einsum("bhqk,bhkd->bhqd", a, v).transpose(0, 2, 1, 3).reshape(B, V, D)
    x1 = h + (ctx @ params["wo"][l] + params["bo"][l])
    xn = _ln(x1, params["g1"][l], params["be1"][l])
    y = jnp.maximum(xn @ params["w1"][l] + params["b1"][l], 0.0)
    y = y @ params["w2"][l] + params["b2"][l]
    return _ln(xn + y, params["g2"][l], params["be2"][l])


def reference_forward(params, x_enc, x_mark_enc, x_dec, x_mark_dec):
    del x_dec, x_mark_dec
    x_enc = x_enc[:, :SEQ_LEN, :]
    x_mark_enc = x_mark_enc[:, :SEQ_LEN, :]
    mean = jnp.mean(x_enc, axis=1, keepdims=True)
    xc = x_enc - mean
    std = jnp.sqrt(jnp.var(xc, axis=1, keepdims=True) + EPS)
    xn = xc / std
    tokens = jnp.concatenate([jnp.transpose(xn, (0, 2, 1)),
                              jnp.transpose(x_mark_enc, (0, 2, 1))], axis=1)
    h = tokens @ params["w_emb"] + params["b_emb"]
    for l in range(E_LAYERS):
        h = _ref_layer(h, params, l)
    h = _ln(h, params["gN"], params["bN"])
    proj = h @ params["wp"] + params["bp"]                 # (B, V, pred_len)
    dec = jnp.transpose(proj, (0, 2, 1))[:, :, :ENC_IN]
    dec = dec * std[:, 0, :][:, None, :] + mean[:, 0, :][:, None, :]
    return dec[:, -PRED_LEN:, :]


# ------------------------------ params / main ---------------------------------
def init_params(key):
    def dense(k, fan_in, fan_out):
        k1, k2 = jax.random.split(k)
        w = jax.random.normal(k1, (fan_in, fan_out), F32) * 0.05
        b = jax.random.normal(k2, (1, fan_out), F32) * 0.05
        return w, b

    keys = jax.random.split(key, 2 + E_LAYERS)
    p = {}
    p["w_emb"], p["b_emb"] = dense(keys[0], SEQ_LEN, D_MODEL)

    wqkv, bqkv, wo, bo, w1, b1, w2, b2 = ([] for _ in range(8))
    for li in range(E_LAYERS):
        lk = jax.random.split(keys[1 + li], 6)
        wq, bq = dense(lk[0], D_MODEL, D_MODEL)
        wk, bk = dense(lk[1], D_MODEL, D_MODEL)
        wv, bv = dense(lk[2], D_MODEL, D_MODEL)
        wqkv.append(jnp.concatenate([wq, wk, wv], axis=1))
        bqkv.append(jnp.concatenate([bq, bk, bv], axis=1))
        w, b = dense(lk[3], D_MODEL, D_MODEL); wo.append(w); bo.append(b)
        w, b = dense(lk[4], D_MODEL, D_FF);    w1.append(w); b1.append(b)
        w, b = dense(lk[5], D_FF, D_MODEL);    w2.append(w); b2.append(b)

    p["wqkv"] = jnp.stack(wqkv); p["bqkv"] = jnp.stack(bqkv)
    p["wo"] = jnp.stack(wo);     p["bo"] = jnp.stack(bo)
    p["w1"] = jnp.stack(w1);     p["b1"] = jnp.stack(b1)
    p["w2"] = jnp.stack(w2);     p["b2"] = jnp.stack(b2)
    p["g1"] = jnp.ones((E_LAYERS, 1, D_MODEL), F32)
    p["be1"] = jnp.zeros((E_LAYERS, 1, D_MODEL), F32)
    p["g2"] = jnp.ones((E_LAYERS, 1, D_MODEL), F32)
    p["be2"] = jnp.zeros((E_LAYERS, 1, D_MODEL), F32)
    p["gN"] = jnp.ones((1, D_MODEL), F32)
    p["bN"] = jnp.zeros((1, D_MODEL), F32)
    p["wp"], bp = dense(keys[-1], D_MODEL, PRED_LEN)
    p["bp"] = bp                                   # (1, pred_len) for the reference
    p["bp_col"] = bp.reshape(PRED_LEN, 1)          # column layout for the kernel
    return p


if __name__ == "__main__":
    key = jax.random.PRNGKey(0)
    kp, k1, k2, k3, k4 = jax.random.split(key, 5)
    params = init_params(kp)

    x_enc = jax.random.normal(k1, (BATCH, SEQ_LEN, ENC_IN), F32)
    x_mark_enc = jax.random.normal(k2, (BATCH, SEQ_LEN, MARK_DIM), F32)
    x_dec = jax.random.normal(k3, (BATCH, LABEL_LEN + PRED_LEN, ENC_IN), F32)
    x_mark_dec = jax.random.normal(k4, (BATCH, LABEL_LEN + PRED_LEN, MARK_DIM), F32)

    fwd = jax.jit(pallas_model_forward)
    out = fwd(params, x_enc, x_mark_enc, x_dec, x_mark_dec)
    out = jax.block_until_ready(out)

    ref = reference_forward(params, x_enc, x_mark_enc, x_dec, x_mark_dec)
    ref = jax.block_until_ready(ref)

    assert out.shape == (BATCH, PRED_LEN, ENC_IN), out.shape
    assert jnp.allclose(out, ref, atol=1e-4, rtol=1e-4), float(jnp.max(jnp.abs(out - ref)))
    print("KERNEL_OK")
</pallas_src>

<mosaic_0001>
module attributes {stable_mosaic.version = 11 : i64} {
  func.func @_fused_forward_kernel(%arg0: i32, %arg1: memref<1x16x4xf32, #tpu.memory_space<vmem>>, %arg2: memref<1x16x4xf32, #tpu.memory_space<vmem>>, %arg3: memref<16x32xf32, #tpu.memory_space<vmem>>, %arg4: memref<1x32xf32, #tpu.memory_space<vmem>>, %arg5: memref<2x32x96xf32, #tpu.memory_space<vmem>>, %arg6: memref<2x1x96xf32, #tpu.memory_space<vmem>>, %arg7: memref<2x32x32xf32, #tpu.memory_space<vmem>>, %arg8: memref<2x1x32xf32, #tpu.memory_space<vmem>>, %arg9: memref<2x1x32xf32, #tpu.memory_space<vmem>>, %arg10: memref<2x1x32xf32, #tpu.memory_space<vmem>>, %arg11: memref<2x32x64xf32, #tpu.memory_space<vmem>>, %arg12: memref<2x1x64xf32, #tpu.memory_space<vmem>>, %arg13: memref<2x64x32xf32, #tpu.memory_space<vmem>>, %arg14: memref<2x1x32xf32, #tpu.memory_space<vmem>>, %arg15: memref<2x1x32xf32, #tpu.memory_space<vmem>>, %arg16: memref<2x1x32xf32, #tpu.memory_space<vmem>>, %arg17: memref<1x32xf32, #tpu.memory_space<vmem>>, %arg18: memref<1x32xf32, #tpu.memory_space<vmem>>, %arg19: memref<32x8xf32, #tpu.memory_space<vmem>>, %arg20: memref<8x1xf32, #tpu.memory_space<vmem>>, %arg21: memref<1x8x4xf32, #tpu.memory_space<vmem>>) attributes {dimension_semantics = [#tpu.dimension_semantics<parallel>], iteration_bounds = array<i64: 2>, scalar_prefetch = 0 : i64, scratch_operands = 0 : i64, tpu.core_type = #tpu.core_type<tc>, window_params = [{transform_indices = @transform_0, window_bounds = array<i64: 1, 16, 4>}, {transform_indices = @transform_1, window_bounds = array<i64: 1, 16, 4>}, {pipeline_mode = #tpu.pipeline_mode<synchronous>, transform_indices = @transform_2, window_bounds = array<i64: 16, 32>}, {pipeline_mode = #tpu.pipeline_mode<synchronous>, transform_indices = @transform_3, window_bounds = array<i64: 1, 32>}, {pipeline_mode = #tpu.pipeline_mode<synchronous>, transform_indices = @transform_4, window_bounds = array<i64: 2, 32, 96>}, {pipeline_mode = #tpu.pipeline_mode<synchronous>, transform_indices = @transform_5, window_bounds = array<i64: 2, 1, 96>}, {pipeline_mode = #tpu.pipeline_mode<synchronous>, transform_indices = @transform_6, window_bounds = array<i64: 2, 32, 32>}, {pipeline_mode = #tpu.pipeline_mode<synchronous>, transform_indices = @transform_7, window_bounds = array<i64: 2, 1, 32>}, {pipeline_mode = #tpu.pipeline_mode<synchronous>, transform_indices = @transform_8, window_bounds = array<i64: 2, 1, 32>}, {pipeline_mode = #tpu.pipeline_mode<synchronous>, transform_indices = @transform_9, window_bounds = array<i64: 2, 1, 32>}, {pipeline_mode = #tpu.pipeline_mode<synchronous>, transform_indices = @transform_10, window_bounds = array<i64: 2, 32, 64>}, {pipeline_mode = #tpu.pipeline_mode<synchronous>, transform_indices = @transform_11, window_bounds = array<i64: 2, 1, 64>}, {pipeline_mode = #tpu.pipeline_mode<synchronous>, transform_indices = @transform_12, window_bounds = array<i64: 2, 64, 32>}, {pipeline_mode = #tpu.pipeline_mode<synchronous>, transform_indices = @transform_13, window_bounds = array<i64: 2, 1, 32>}, {pipeline_mode = #tpu.pipeline_mode<synchronous>, transform_indices = @transform_14, window_bounds = array<i64: 2, 1, 32>}, {pipeline_mode = #tpu.pipeline_mode<synchronous>, transform_indices = @transform_15, window_bounds = array<i64: 2, 1, 32>}, {pipeline_mode = #tpu.pipeline_mode<synchronous>, transform_indices = @transform_16, window_bounds = array<i64: 1, 32>}, {pipeline_mode = #tpu.pipeline_mode<synchronous>, transform_indices = @transform_17, window_bounds = array<i64: 1, 32>}, {pipeline_mode = #tpu.pipeline_mode<synchronous>, transform_indices = @transform_18, window_bounds = array<i64: 32, 8>}, {pipeline_mode = #tpu.pipeline_mode<synchronous>, transform_indices = @transform_19, window_bounds = array<i64: 8, 1>}, {transform_indices = @transform_20, window_bounds = array<i64: 1, 8, 4>}]} {
    %c0 = arith.constant 0 : index
    %c0_0 = arith.constant 0 : index
    %c0_1 = arith.constant 0 : index
    %0 = vector.load %arg1[%c0, %c0_0, %c0_1] : memref<1x16x4xf32, #tpu.memory_space<vmem>>, vector<1x16x4xf32>
    %1 = vector.shape_cast %0 : vector<1x16x4xf32> to vector<16x4xf32>
    %cst = arith.constant dense<0.000000e+00> : vector<4xf32>
    %2 = vector.multi_reduction <add>, %1, %cst [0] : vector<16x4xf32> to vector<4xf32>
    %3 = vector.shape_cast %2 : vector<4xf32> to vector<1x4xf32>
    %cst_2 = arith.constant 1.600000e+01 : f32
    %4 = vector.broadcast %cst_2 : f32 to vector<1x4xf32>
    %5 = arith.divf %3, %4 : vector<1x4xf32>
    %6 = vector.broadcast %5 : vector<1x4xf32> to vector<16x4xf32>
    %7 = arith.subf %1, %6 : vector<16x4xf32>
    %8 = arith.mulf %7, %7 : vector<16x4xf32>
    %cst_3 = arith.constant dense<0.000000e+00> : vector<4xf32>
    %9 = vector.multi_reduction <add>, %8, %cst_3 [0] : vector<16x4xf32> to vector<4xf32>
    %10 = vector.shape_cast %9 : vector<4xf32> to vector<1x4xf32>
    %cst_4 = arith.constant 1.600000e+01 : f32
    %11 = vector.broadcast %cst_4 : f32 to vector<1x4xf32>
    %12 = arith.divf %10, %11 : vector<1x4xf32>
    %cst_5 = arith.constant 9.99999974E-6 : f32
    %13 = vector.broadcast %cst_5 : f32 to vector<1x4xf32>
    %14 = arith.addf %12, %13 : vector<1x4xf32>
    %15 = math.sqrt %14 : vector<1x4xf32>
    %16 = vector.broadcast %15 : vector<1x4xf32> to vector<16x4xf32>
    %17 = arith.divf %7, %16 : vector<16x4xf32>
    %c0_6 = arith.constant 0 : index
    %c0_7 = arith.constant 0 : index
    %18 = vector.load %arg3[%c0_6, %c0_7] : memref<16x32xf32, #tpu.memory_space<vmem>>, vector<16x32xf32>
    %cst_8 = arith.constant dense<0.000000e+00> : vector<4x32xf32>
    %19 = tpu.matmul %17, %18, %cst_8 {dimension_numbers = #tpu.dot_dimension_numbers<[0], [0], [1], [1], [0, 1, 1, 1], [], []>} : vector<16x4xf32>, vector<16x32xf32>, vector<4x32xf32> -> vector<4x32xf32>
    %c0_9 = arith.constant 0 : index
    %c0_10 = arith.constant 0 : index
    %c0_11 = arith.constant 0 : index
    %20 = vector.load %arg2[%c0_9, %c0_10, %c0_11] : memref<1x16x4xf32, #tpu.memory_space<vmem>>, vector<1x16x4xf32>
    %21 = vector.shape_cast %20 : vector<1x16x4xf32> to vector<16x4xf32>
    %cst_12 = arith.constant dense<0.000000e+00> : vector<4x32xf32>
    %22 = tpu.matmul %21, %18, %cst_12 {dimension_numbers = #tpu.dot_dimension_numbers<[0], [0], [1], [1], [0, 1, 1, 1], [], []>} : vector<16x4xf32>, vector<16x32xf32>, vector<4x32xf32> -> vector<4x32xf32>
    %23 = tpu.concatenate %19, %22 in 0 : vector<4x32xf32>, vector<4x32xf32> -> vector<8x32xf32>
    %c0_13 = arith.constant 0 : index
    %c0_14 = arith.constant 0 : index
    %24 = vector.load %arg4[%c0_13, %c0_14] : memref<1x32xf32, #tpu.memory_space<vmem>>, vector<1x32xf32>
    %25 = vector.broadcast %24 : vector<1x32xf32> to vector<8x32xf32>
    %26 = arith.addf %23, %25 : vector<8x32xf32>
    %c0_15 = arith.constant 0 : index
    %c0_16 = arith.constant 0 : index
    %c0_17 = arith.constant 0 : index
    %27 = vector.load %arg5[%c0_15, %c0_16, %c0_17] : memref<2x32x96xf32, #tpu.memory_space<vmem>>, vector<1x32x96xf32>
    %28 = vector.shape_cast %27 : vector<1x32x96xf32> to vector<32x96xf32>
    %cst_18 = arith.constant dense<0.000000e+00> : vector<8x96xf32>
    %29 = tpu.matmul %26, %28, %cst_18 {dimension_numbers = #tpu.dot_dimension_numbers<[1], [0], [0], [1], [0, 0, 1, 1], [], []>} : vector<8x32xf32>, vector<32x96xf32>, vector<8x96xf32> -> vector<8x96xf32>
    %c0_19 = arith.constant 0 : index
    %c0_20 = arith.constant 0 : index
    %c0_21 = arith.constant 0 : index
    %30 = vector.load %arg6[%c0_19, %c0_20, %c0_21] : memref<2x1x96xf32, #tpu.memory_space<vmem>>, vector<1x1x96xf32>
    %31 = vector.shape_cast %30 : vector<1x1x96xf32> to vector<1x96xf32>
    %32 = vector.broadcast %31 : vector<1x96xf32> to vector<8x96xf32>
    %33 = arith.addf %29, %32 : vector<8x96xf32>
    %34 = vector.extract_strided_slice %33 {offsets = [0, 0], sizes = [8, 8], strides = [1, 1]} : vector<8x96xf32> to vector<8x8xf32>
    %35 = vector.extract_strided_slice %33 {offsets = [0, 32], sizes = [8, 8], strides = [1, 1]} : vector<8x96xf32> to vector<8x8xf32>
    %36 = vector.extract_strided_slice %33 {offsets = [0, 64], sizes = [8, 8], strides = [1, 1]} : vector<8x96xf32> to vector<8x8xf32>
    %cst_22 = arith.constant dense<0.000000e+00> : vector<8x8xf32>
    %37 = tpu.matmul %34, %35, %cst_22 {dimension_numbers = #tpu.dot_dimension_numbers<[1], [1], [0], [0], [0, 0, 1, 0], [], []>} : vector<8x8xf32>, vector<8x8xf32>, vector<8x8xf32> -> vector<8x8xf32>
    %cst_23 = arith.constant 0.353553385 : f32
    %38 = vector.broadcast %cst_23 : f32 to vector<8x8xf32>
    %39 = arith.mulf %37, %38 : vector<8x8xf32>
    %cst_24 = arith.constant dense<0xFF800000> : vector<8xf32>
    %40 = vector.multi_reduction <maximumf>, %39, %cst_24 [1] : vector<8x8xf32> to vector<8xf32>
    %41 = vector.shape_cast %40 : vector<8xf32> to vector<8x1xf32>
    %42 = vector.broadcast %41 : vector<8x1xf32> to vector<8x8xf32>
    %43 = arith.subf %39, %42 : vector<8x8xf32>
    %44 = math.exp %43 : vector<8x8xf32>
    %cst_25 = arith.constant dense<0.000000e+00> : vector<8xf32>
    %45 = vector.multi_reduction <add>, %44, %cst_25 [1] : vector<8x8xf32> to vector<8xf32>
    %46 = vector.shape_cast %45 : vector<8xf32> to vector<8x1xf32>
    %47 = vector.broadcast %46 : vector<8x1xf32> to vector<8x8xf32>
    %48 = arith.divf %44, %47 : vector<8x8xf32>
    %cst_26 = arith.constant dense<0.000000e+00> : vector<8x8xf32>
    %49 = tpu.matmul %48, %36, %cst_26 {dimension_numbers = #tpu.dot_dimension_numbers<[1], [0], [0], [1], [0, 0, 1, 1], [], []>} : vector<8x8xf32>, vector<8x8xf32>, vector<8x8xf32> -> vector<8x8xf32>
    %50 = vector.extract_strided_slice %33 {offsets = [0, 8], sizes = [8, 8], strides = [1, 1]} : vector<8x96xf32> to vector<8x8xf32>
    %51 = vector.extract_strided_slice %33 {offsets = [0, 40], sizes = [8, 8], strides = [1, 1]} : vector<8x96xf32> to vector<8x8xf32>
    %52 = vector.extract_strided_slice %33 {offsets = [0, 72], sizes = [8, 8], strides = [1, 1]} : vector<8x96xf32> to vector<8x8xf32>
    %cst_27 = arith.constant dense<0.000000e+00> : vector<8x8xf32>
    %53 = tpu.matmul %50, %51, %cst_27 {dimension_numbers = #tpu.dot_dimension_numbers<[1], [1], [0], [0], [0, 0, 1, 0], [], []>} : vector<8x8xf32>, vector<8x8xf32>, vector<8x8xf32> -> vector<8x8xf32>
    %cst_28 = arith.constant 0.353553385 : f32
    %54 = vector.broadcast %cst_28 : f32 to vector<8x8xf32>
    %55 = arith.mulf %53, %54 : vector<8x8xf32>
    %cst_29 = arith.constant dense<0xFF800000> : vector<8xf32>
    %56 = vector.multi_reduction <maximumf>, %55, %cst_29 [1] : vector<8x8xf32> to vector<8xf32>
    %57 = vector.shape_cast %56 : vector<8xf32> to vector<8x1xf32>
    %58 = vector.broadcast %57 : vector<8x1xf32> to vector<8x8xf32>
    %59 = arith.subf %55, %58 : vector<8x8xf32>
    %60 = math.exp %59 : vector<8x8xf32>
    %cst_30 = arith.constant dense<0.000000e+00> : vector<8xf32>
    %61 = vector.multi_reduction <add>, %60, %cst_30 [1] : vector<8x8xf32> to vector<8xf32>
    %62 = vector.shape_cast %61 : vector<8xf32> to vector<8x1xf32>
    %63 = vector.broadcast %62 : vector<8x1xf32> to vector<8x8xf32>
    %64 = arith.divf %60, %63 : vector<8x8xf32>
    %cst_31 = arith.constant dense<0.000000e+00> : vector<8x8xf32>
    %65 = tpu.matmul %64, %52, %cst_31 {dimension_numbers = #tpu.dot_dimension_numbers<[1], [0], [0], [1], [0, 0, 1, 1], [], []>} : vector<8x8xf32>, vector<8x8xf32>, vector<8x8xf32> -> vector<8x8xf32>
    %66 = vector.extract_strided_slice %33 {offsets = [0, 16], sizes = [8, 8], strides = [1, 1]} : vector<8x96xf32> to vector<8x8xf32>
    %67 = vector.extract_strided_slice %33 {offsets = [0, 48], sizes = [8, 8], strides = [1, 1]} : vector<8x96xf32> to vector<8x8xf32>
    %68 = vector.extract_strided_slice %33 {offsets = [0, 80], sizes = [8, 8], strides = [1, 1]} : vector<8x96xf32> to vector<8x8xf32>
    %cst_32 = arith.constant dense<0.000000e+00> : vector<8x8xf32>
    %69 = tpu.matmul %66, %67, %cst_32 {dimension_numbers = #tpu.dot_dimension_numbers<[1], [1], [0], [0], [0, 0, 1, 0], [], []>} : vector<8x8xf32>, vector<8x8xf32>, vector<8x8xf32> -> vector<8x8xf32>
    %cst_33 = arith.constant 0.353553385 : f32
    %70 = vector.broadcast %cst_33 : f32 to vector<8x8xf32>
    %71 = arith.mulf %69, %70 : vector<8x8xf32>
    %cst_34 = arith.constant dense<0xFF800000> : vector<8xf32>
    %72 = vector.multi_reduction <maximumf>, %71, %cst_34 [1] : vector<8x8xf32> to vector<8xf32>
    %73 = vector.shape_cast %72 : vector<8xf32> to vector<8x1xf32>
    %74 = vector.broadcast %73 : vector<8x1xf32> to vector<8x8xf32>
    %75 = arith.subf %71, %74 : vector<8x8xf32>
    %76 = math.exp %75 : vector<8x8xf32>
    %cst_35 = arith.constant dense<0.000000e+00> : vector<8xf32>
    %77 = vector.multi_reduction <add>, %76, %cst_35 [1] : vector<8x8xf32> to vector<8xf32>
    %78 = vector.shape_cast %77 : vector<8xf32> to vector<8x1xf32>
    %79 = vector.broadcast %78 : vector<8x1xf32> to vector<8x8xf32>
    %80 = arith.divf %76, %79 : vector<8x8xf32>
    %cst_36 = arith.constant dense<0.000000e+00> : vector<8x8xf32>
    %81 = tpu.matmul %80, %68, %cst_36 {dimension_numbers = #tpu.dot_dimension_numbers<[1], [0], [0], [1], [0, 0, 1, 1], [], []>} : vector<8x8xf32>, vector<8x8xf32>, vector<8x8xf32> -> vector<8x8xf32>
    %82 = vector.extract_strided_slice %33 {offsets = [0, 24], sizes = [8, 8], strides = [1, 1]} : vector<8x96xf32> to vector<8x8xf32>
    %83 = vector.extract_strided_slice %33 {offsets = [0, 56], sizes = [8, 8], strides = [1, 1]} : vector<8x96xf32> to vector<8x8xf32>
    %84 = vector.extract_strided_slice %33 {offsets = [0, 88], sizes = [8, 8], strides = [1, 1]} : vector<8x96xf32> to vector<8x8xf32>
    %cst_37 = arith.constant dense<0.000000e+00> : vector<8x8xf32>
    %85 = tpu.matmul %82, %83, %cst_37 {dimension_numbers = #tpu.dot_dimension_numbers<[1], [1], [0], [0], [0, 0, 1, 0], [], []>} : vector<8x8xf32>, vector<8x8xf32>, vector<8x8xf32> -> vector<8x8xf32>
    %cst_38 = arith.constant 0.353553385 : f32
    %86 = vector.broadcast %cst_38 : f32 to vector<8x8xf32>
    %87 = arith.mulf %85, %86 : vector<8x8xf32>
    %cst_39 = arith.constant dense<0xFF800000> : vector<8xf32>
    %88 = vector.multi_reduction <maximumf>, %87, %cst_39 [1] : vector<8x8xf32> to vector<8xf32>
    %89 = vector.shape_cast %88 : vector<8xf32> to vector<8x1xf32>
    %90 = vector.broadcast %89 : vector<8x1xf32> to vector<8x8xf32>
    %91 = arith.subf %87, %90 : vector<8x8xf32>
    %92 = math.exp %91 : vector<8x8xf32>
    %cst_40 = arith.constant dense<0.000000e+00> : vector<8xf32>
    %93 = vector.multi_reduction <add>, %92, %cst_40 [1] : vector<8x8xf32> to vector<8xf32>
    %94 = vector.shape_cast %93 : vector<8xf32> to vector<8x1xf32>
    %95 = vector.broadcast %94 : vector<8x1xf32> to vector<8x8xf32>
    %96 = arith.divf %92, %95 : vector<8x8xf32>
    %cst_41 = arith.constant dense<0.000000e+00> : vector<8x8xf32>
    %97 = tpu.matmul %96, %84, %cst_41 {dimension_numbers = #tpu.dot_dimension_numbers<[1], [0], [0], [1], [0, 0, 1, 1], [], []>} : vector<8x8xf32>, vector<8x8xf32>, vector<8x8xf32> -> vector<8x8xf32>
    %98 = tpu.concatenate %49, %65, %81, %97 in 1 : vector<8x8xf32>, vector<8x8xf32>, vector<8x8xf32>, vector<8x8xf32> -> vector<8x32xf32>
    %c0_42 = arith.constant 0 : index
    %c0_43 = arith.constant 0 : index
    %c0_44 = arith.constant 0 : index
    %99 = vector.load %arg7[%c0_42, %c0_43, %c0_44] : memref<2x32x32xf32, #tpu.memory_space<vmem>>, vector<1x32x32xf32>
    %100 = vector.shape_cast %99 : vector<1x32x32xf32> to vector<32x32xf32>
    %cst_45 = arith.constant dense<0.000000e+00> : vector<8x32xf32>
    %101 = tpu.matmul %98, %100, %cst_45 {dimension_numbers = #tpu.dot_dimension_numbers<[1], [0], [0], [1], [0, 0, 1, 1], [], []>} : vector<8x32xf32>, vector<32x32xf32>, vector<8x32xf32> -> vector<8x32xf32>
    %c0_46 = arith.constant 0 : index
    %c0_47 = arith.constant 0 : index
    %c0_48 = arith.constant 0 : index
    %102 = vector.load %arg8[%c0_46, %c0_47, %c0_48] : memref<2x1x32xf32, #tpu.memory_space<vmem>>, vector<1x1x32xf32>
    %103 = vector.shape_cast %102 : vector<1x1x32xf32> to vector<1x32xf32>
    %104 = vector.broadcast %103 : vector<1x32xf32> to vector<8x32xf32>
    %105 = arith.addf %101, %104 : vector<8x32xf32>
    %106 = arith.addf %26, %105 : vector<8x32xf32>
    %c0_49 = arith.constant 0 : index
    %c0_50 = arith.constant 0 : index
    %c0_51 = arith.constant 0 : index
    %107 = vector.load %arg9[%c0_49, %c0_50, %c0_51] : memref<2x1x32xf32, #tpu.memory_space<vmem>>, vector<1x1x32xf32>
    %108 = vector.shape_cast %107 : vector<1x1x32xf32> to vector<1x32xf32>
    %c0_52 = arith.constant 0 : index
    %c0_53 = arith.constant 0 : index
    %c0_54 = arith.constant 0 : index
    %109 = vector.load %arg10[%c0_52, %c0_53, %c0_54] : memref<2x1x32xf32, #tpu.memory_space<vmem>>, vector<1x1x32xf32>
    %110 = vector.shape_cast %109 : vector<1x1x32xf32> to vector<1x32xf32>
    %cst_55 = arith.constant dense<0.000000e+00> : vector<8xf32>
    %111 = vector.multi_reduction <add>, %106, %cst_55 [1] : vector<8x32xf32> to vector<8xf32>
    %112 = vector.shape_cast %111 : vector<8xf32> to vector<8x1xf32>
    %cst_56 = arith.constant 3.200000e+01 : f32
    %113 = vector.broadcast %cst_56 : f32 to vector<8x1xf32>
    %114 = arith.divf %112, %113 : vector<8x1xf32>
    %115 = vector.broadcast %114 : vector<8x1xf32> to vector<8x32xf32>
    %116 = arith.subf %106, %115 : vector<8x32xf32>
    %117 = arith.mulf %116, %116 : vector<8x32xf32>
    %cst_57 = arith.constant dense<0.000000e+00> : vector<8xf32>
    %118 = vector.multi_reduction <add>, %117, %cst_57 [1] : vector<8x32xf32> to vector<8xf32>
    %119 = vector.shape_cast %118 : vector<8xf32> to vector<8x1xf32>
    %cst_58 = arith.constant 3.200000e+01 : f32
    %120 = vector.broadcast %cst_58 : f32 to vector<8x1xf32>
    %121 = arith.divf %119, %120 : vector<8x1xf32>
    %cst_59 = arith.constant 9.99999974E-6 : f32
    %122 = vector.broadcast %cst_59 : f32 to vector<8x1xf32>
    %123 = arith.addf %121, %122 : vector<8x1xf32>
    %124 = math.rsqrt %123 : vector<8x1xf32>
    %125 = vector.broadcast %124 : vector<8x1xf32> to vector<8x32xf32>
    %126 = arith.mulf %116, %125 : vector<8x32xf32>
    %127 = vector.broadcast %108 : vector<1x32xf32> to vector<8x32xf32>
    %128 = arith.mulf %126, %127 : vector<8x32xf32>
    %129 = vector.broadcast %110 : vector<1x32xf32> to vector<8x32xf32>
    %130 = arith.addf %128, %129 : vector<8x32xf32>
    %c0_60 = arith.constant 0 : index
    %c0_61 = arith.constant 0 : index
    %c0_62 = arith.constant 0 : index
    %131 = vector.load %arg11[%c0_60, %c0_61, %c0_62] : memref<2x32x64xf32, #tpu.memory_space<vmem>>, vector<1x32x64xf32>
    %132 = vector.shape_cast %131 : vector<1x32x64xf32> to vector<32x64xf32>
    %cst_63 = arith.constant dense<0.000000e+00> : vector<8x64xf32>
    %133 = tpu.matmul %130, %132, %cst_63 {dimension_numbers = #tpu.dot_dimension_numbers<[1], [0], [0], [1], [0, 0, 1, 1], [], []>} : vector<8x32xf32>, vector<32x64xf32>, vector<8x64xf32> -> vector<8x64xf32>
    %c0_64 = arith.constant 0 : index
    %c0_65 = arith.constant 0 : index
    %c0_66 = arith.constant 0 : index
    %134 = vector.load %arg12[%c0_64, %c0_65, %c0_66] : memref<2x1x64xf32, #tpu.memory_space<vmem>>, vector<1x1x64xf32>
    %135 = vector.shape_cast %134 : vector<1x1x64xf32> to vector<1x64xf32>
    %136 = vector.broadcast %135 : vector<1x64xf32> to vector<8x64xf32>
    %137 = arith.addf %133, %136 : vector<8x64xf32>
    %cst_67 = arith.constant 0.000000e+00 : f32
    %138 = vector.broadcast %cst_67 : f32 to vector<8x64xf32>
    %139 = arith.maximumf %137, %138 : vector<8x64xf32>
    %c0_68 = arith.constant 0 : index
    %c0_69 = arith.constant 0 : index
    %c0_70 = arith.constant 0 : index
    %140 = vector.load %arg13[%c0_68, %c0_69, %c0_70] : memref<2x64x32xf32, #tpu.memory_space<vmem>>, vector<1x64x32xf32>
    %141 = vector.shape_cast %140 : vector<1x64x32xf32> to vector<64x32xf32>
    %cst_71 = arith.constant dense<0.000000e+00> : vector<8x32xf32>
    %142 = tpu.matmul %139, %141, %cst_71 {dimension_numbers = #tpu.dot_dimension_numbers<[1], [0], [0], [1], [0, 0, 1, 1], [], []>} : vector<8x64xf32>, vector<64x32xf32>, vector<8x32xf32> -> vector<8x32xf32>
    %c0_72 = arith.constant 0 : index
    %c0_73 = arith.constant 0 : index
    %c0_74 = arith.constant 0 : index
    %143 = vector.load %arg14[%c0_72, %c0_73, %c0_74] : memref<2x1x32xf32, #tpu.memory_space<vmem>>, vector<1x1x32xf32>
    %144 = vector.shape_cast %143 : vector<1x1x32xf32> to vector<1x32xf32>
    %145 = vector.broadcast %144 : vector<1x32xf32> to vector<8x32xf32>
    %146 = arith.addf %142, %145 : vector<8x32xf32>
    %147 = arith.addf %130, %146 : vector<8x32xf32>
    %c0_75 = arith.constant 0 : index
    %c0_76 = arith.constant 0 : index
    %c0_77 = arith.constant 0 : index
    %148 = vector.load %arg15[%c0_75, %c0_76, %c0_77] : memref<2x1x32xf32, #tpu.memory_space<vmem>>, vector<1x1x32xf32>
    %149 = vector.shape_cast %148 : vector<1x1x32xf32> to vector<1x32xf32>
    %c0_78 = arith.constant 0 : index
    %c0_79 = arith.constant 0 : index
    %c0_80 = arith.constant 0 : index
    %150 = vector.load %arg16[%c0_78, %c0_79, %c0_80] : memref<2x1x32xf32, #tpu.memory_space<vmem>>, vector<1x1x32xf32>
    %151 = vector.shape_cast %150 : vector<1x1x32xf32> to vector<1x32xf32>
    %cst_81 = arith.constant dense<0.000000e+00> : vector<8xf32>
    %152 = vector.multi_reduction <add>, %147, %cst_81 [1] : vector<8x32xf32> to vector<8xf32>
    %153 = vector.shape_cast %152 : vector<8xf32> to vector<8x1xf32>
    %cst_82 = arith.constant 3.200000e+01 : f32
    %154 = vector.broadcast %cst_82 : f32 to vector<8x1xf32>
    %155 = arith.divf %153, %154 : vector<8x1xf32>
    %156 = vector.broadcast %155 : vector<8x1xf32> to vector<8x32xf32>
    %157 = arith.subf %147, %156 : vector<8x32xf32>
    %158 = arith.mulf %157, %157 : vector<8x32xf32>
    %cst_83 = arith.constant dense<0.000000e+00> : vector<8xf32>
    %159 = vector.multi_reduction <add>, %158, %cst_83 [1] : vector<8x32xf32> to vector<8xf32>
    %160 = vector.shape_cast %159 : vector<8xf32> to vector<8x1xf32>
    %cst_84 = arith.constant 3.200000e+01 : f32
    %161 = vector.broadcast %cst_84 : f32 to vector<8x1xf32>
    %162 = arith.divf %160, %161 : vector<8x1xf32>
    %cst_85 = arith.constant 9.99999974E-6 : f32
    %163 = vector.broadcast %cst_85 : f32 to vector<8x1xf32>
    %164 = arith.addf %162, %163 : vector<8x1xf32>
    %165 = math.rsqrt %164 : vector<8x1xf32>
    %166 = vector.broadcast %165 : vector<8x1xf32> to vector<8x32xf32>
    %167 = arith.mulf %157, %166 : vector<8x32xf32>
    %168 = vector.broadcast %149 : vector<1x32xf32> to vector<8x32xf32>
    %169 = arith.mulf %167, %168 : vector<8x32xf32>
    %170 = vector.broadcast %151 : vector<1x32xf32> to vector<8x32xf32>
    %171 = arith.addf %169, %170 : vector<8x32xf32>
    %c1 = arith.constant 1 : index
    %c0_86 = arith.constant 0 : index
    %c0_87 = arith.constant 0 : index
    %172 = vector.load %arg5[%c1, %c0_86, %c0_87] : memref<2x32x96xf32, #tpu.memory_space<vmem>>, vector<1x32x96xf32>
    %173 = vector.shape_cast %172 : vector<1x32x96xf32> to vector<32x96xf32>
    %cst_88 = arith.constant dense<0.000000e+00> : vector<8x96xf32>
    %174 = tpu.matmul %171, %173, %cst_88 {dimension_numbers = #tpu.dot_dimension_numbers<[1], [0], [0], [1], [0, 0, 1, 1], [], []>} : vector<8x32xf32>, vector<32x96xf32>, vector<8x96xf32> -> vector<8x96xf32>
    %c1_89 = arith.constant 1 : index
    %c0_90 = arith.constant 0 : index
    %c0_91 = arith.constant 0 : index
    %175 = vector.load %arg6[%c1_89, %c0_90, %c0_91] : memref<2x1x96xf32, #tpu.memory_space<vmem>>, vector<1x1x96xf32>
    %176 = vector.shape_cast %175 : vector<1x1x96xf32> to vector<1x96xf32>
    %177 = vector.broadcast %176 : vector<1x96xf32> to vector<8x96xf32>
    %178 = arith.addf %174, %177 : vector<8x96xf32>
    %179 = vector.extract_strided_slice %178 {offsets = [0, 0], sizes = [8, 8], strides = [1, 1]} : vector<8x96xf32> to vector<8x8xf32>
    %180 = vector.extract_strided_slice %178 {offsets = [0, 32], sizes = [8, 8], strides = [1, 1]} : vector<8x96xf32> to vector<8x8xf32>
    %181 = vector.extract_strided_slice %178 {offsets = [0, 64], sizes = [8, 8], strides = [1, 1]} : vector<8x96xf32> to vector<8x8xf32>
    %cst_92 = arith.constant dense<0.000000e+00> : vector<8x8xf32>
    %182 = tpu.matmul %179, %180, %cst_92 {dimension_numbers = #tpu.dot_dimension_numbers<[1], [1], [0], [0], [0, 0, 1, 0], [], []>} : vector<8x8xf32>, vector<8x8xf32>, vector<8x8xf32> -> vector<8x8xf32>
    %cst_93 = arith.constant 0.353553385 : f32
    %183 = vector.broadcast %cst_93 : f32 to vector<8x8xf32>
    %184 = arith.mulf %182, %183 : vector<8x8xf32>
    %cst_94 = arith.constant dense<0xFF800000> : vector<8xf32>
    %185 = vector.multi_reduction <maximumf>, %184, %cst_94 [1] : vector<8x8xf32> to vector<8xf32>
    %186 = vector.shape_cast %185 : vector<8xf32> to vector<8x1xf32>
    %187 = vector.broadcast %186 : vector<8x1xf32> to vector<8x8xf32>
    %188 = arith.subf %184, %187 : vector<8x8xf32>
    %189 = math.exp %188 : vector<8x8xf32>
    %cst_95 = arith.constant dense<0.000000e+00> : vector<8xf32>
    %190 = vector.multi_reduction <add>, %189, %cst_95 [1] : vector<8x8xf32> to vector<8xf32>
    %191 = vector.shape_cast %190 : vector<8xf32> to vector<8x1xf32>
    %192 = vector.broadcast %191 : vector<8x1xf32> to vector<8x8xf32>
    %193 = arith.divf %189, %192 : vector<8x8xf32>
    %cst_96 = arith.constant dense<0.000000e+00> : vector<8x8xf32>
    %194 = tpu.matmul %193, %181, %cst_96 {dimension_numbers = #tpu.dot_dimension_numbers<[1], [0], [0], [1], [0, 0, 1, 1], [], []>} : vector<8x8xf32>, vector<8x8xf32>, vector<8x8xf32> -> vector<8x8xf32>
    %195 = vector.extract_strided_slice %178 {offsets = [0, 8], sizes = [8, 8], strides = [1, 1]} : vector<8x96xf32> to vector<8x8xf32>
    %196 = vector.extract_strided_slice %178 {offsets = [0, 40], sizes = [8, 8], strides = [1, 1]} : vector<8x96xf32> to vector<8x8xf32>
    %197 = vector.extract_strided_slice %178 {offsets = [0, 72], sizes = [8, 8], strides = [1, 1]} : vector<8x96xf32> to vector<8x8xf32>
    %cst_97 = arith.constant dense<0.000000e+00> : vector<8x8xf32>
    %198 = tpu.matmul %195, %196, %cst_97 {dimension_numbers = #tpu.dot_dimension_numbers<[1], [1], [0], [0], [0, 0, 1, 0], [], []>} : vector<8x8xf32>, vector<8x8xf32>, vector<8x8xf32> -> vector<8x8xf32>
    %cst_98 = arith.constant 0.353553385 : f32
    %199 = vector.broadcast %cst_98 : f32 to vector<8x8xf32>
    %200 = arith.mulf %198, %199 : vector<8x8xf32>
    %cst_99 = arith.constant dense<0xFF800000> : vector<8xf32>
    %201 = vector.multi_reduction <maximumf>, %200, %cst_99 [1] : vector<8x8xf32> to vector<8xf32>
    %202 = vector.shape_cast %201 : vector<8xf32> to vector<8x1xf32>
    %203 = vector.broadcast %202 : vector<8x1xf32> to vector<8x8xf32>
    %204 = arith.subf %200, %203 : vector<8x8xf32>
    %205 = math.exp %204 : vector<8x8xf32>
    %cst_100 = arith.constant dense<0.000000e+00> : vector<8xf32>
    %206 = vector.multi_reduction <add>, %205, %cst_100 [1] : vector<8x8xf32> to vector<8xf32>
    %207 = vector.shape_cast %206 : vector<8xf32> to vector<8x1xf32>
    %208 = vector.broadcast %207 : vector<8x1xf32> to vector<8x8xf32>
    %209 = arith.divf %205, %208 : vector<8x8xf32>
    %cst_101 = arith.constant dense<0.000000e+00> : vector<8x8xf32>
    %210 = tpu.matmul %209, %197, %cst_101 {dimension_numbers = #tpu.dot_dimension_numbers<[1], [0], [0], [1], [0, 0, 1, 1], [], []>} : vector<8x8xf32>, vector<8x8xf32>, vector<8x8xf32> -> vector<8x8xf32>
    %211 = vector.extract_strided_slice %178 {offsets = [0, 16], sizes = [8, 8], strides = [1, 1]} : vector<8x96xf32> to vector<8x8xf32>
    %212 = vector.extract_strided_slice %178 {offsets = [0, 48], sizes = [8, 8], strides = [1, 1]} : vector<8x96xf32> to vector<8x8xf32>
    %213 = vector.extract_strided_slice %178 {offsets = [0, 80], sizes = [8, 8], strides = [1, 1]} : vector<8x96xf32> to vector<8x8xf32>
    %cst_102 = arith.constant dense<0.000000e+00> : vector<8x8xf32>
    %214 = tpu.matmul %211, %212, %cst_102 {dimension_numbers = #tpu.dot_dimension_numbers<[1], [1], [0], [0], [0, 0, 1, 0], [], []>} : vector<8x8xf32>, vector<8x8xf32>, vector<8x8xf32> -> vector<8x8xf32>
    %cst_103 = arith.constant 0.353553385 : f32
    %215 = vector.broadcast %cst_103 : f32 to vector<8x8xf32>
    %216 = arith.mulf %214, %215 : vector<8x8xf32>
    %cst_104 = arith.constant dense<0xFF800000> : vector<8xf32>
    %217 = vector.multi_reduction <maximumf>, %216, %cst_104 [1] : vector<8x8xf32> to vector<8xf32>
    %218 = vector.shape_cast %217 : vector<8xf32> to vector<8x1xf32>
    %219 = vector.broadcast %218 : vector<8x1xf32> to vector<8x8xf32>
    %220 = arith.subf %216, %219 : vector<8x8xf32>
    %221 = math.exp %220 : vector<8x8xf32>
    %cst_105 = arith.constant dense<0.000000e+00> : vector<8xf32>
    %222 = vector.multi_reduction <add>, %221, %cst_105 [1] : vector<8x8xf32> to vector<8xf32>
    %223 = vector.shape_cast %222 : vector<8xf32> to vector<8x1xf32>
    %224 = vector.broadcast %223 : vector<8x1xf32> to vector<8x8xf32>
    %225 = arith.divf %221, %224 : vector<8x8xf32>
    %cst_106 = arith.constant dense<0.000000e+00> : vector<8x8xf32>
    %226 = tpu.matmul %225, %213, %cst_106 {dimension_numbers = #tpu.dot_dimension_numbers<[1], [0], [0], [1], [0, 0, 1, 1], [], []>} : vector<8x8xf32>, vector<8x8xf32>, vector<8x8xf32> -> vector<8x8xf32>
    %227 = vector.extract_strided_slice %178 {offsets = [0, 24], sizes = [8, 8], strides = [1, 1]} : vector<8x96xf32> to vector<8x8xf32>
    %228 = vector.extract_strided_slice %178 {offsets = [0, 56], sizes = [8, 8], strides = [1, 1]} : vector<8x96xf32> to vector<8x8xf32>
    %229 = vector.extract_strided_slice %178 {offsets = [0, 88], sizes = [8, 8], strides = [1, 1]} : vector<8x96xf32> to vector<8x8xf32>
    %cst_107 = arith.constant dense<0.000000e+00> : vector<8x8xf32>
    %230 = tpu.matmul %227, %228, %cst_107 {dimension_numbers = #tpu.dot_dimension_numbers<[1], [1], [0], [0], [0, 0, 1, 0], [], []>} : vector<8x8xf32>, vector<8x8xf32>, vector<8x8xf32> -> vector<8x8xf32>
    %cst_108 = arith.constant 0.353553385 : f32
    %231 = vector.broadcast %cst_108 : f32 to vector<8x8xf32>
    %232 = arith.mulf %230, %231 : vector<8x8xf32>
    %cst_109 = arith.constant dense<0xFF800000> : vector<8xf32>
    %233 = vector.multi_reduction <maximumf>, %232, %cst_109 [1] : vector<8x8xf32> to vector<8xf32>
    %234 = vector.shape_cast %233 : vector<8xf32> to vector<8x1xf32>
    %235 = vector.broadcast %234 : vector<8x1xf32> to vector<8x8xf32>
    %236 = arith.subf %232, %235 : vector<8x8xf32>
    %237 = math.exp %236 : vector<8x8xf32>
    %cst_110 = arith.constant dense<0.000000e+00> : vector<8xf32>
    %238 = vector.multi_reduction <add>, %237, %cst_110 [1] : vector<8x8xf32> to vector<8xf32>
    %239 = vector.shape_cast %238 : vector<8xf32> to vector<8x1xf32>
    %240 = vector.broadcast %239 : vector<8x1xf32> to vector<8x8xf32>
    %241 = arith.divf %237, %240 : vector<8x8xf32>
    %cst_111 = arith.constant dense<0.000000e+00> : vector<8x8xf32>
    %242 = tpu.matmul %241, %229, %cst_111 {dimension_numbers = #tpu.dot_dimension_numbers<[1], [0], [0], [1], [0, 0, 1, 1], [], []>} : vector<8x8xf32>, vector<8x8xf32>, vector<8x8xf32> -> vector<8x8xf32>
    %243 = tpu.concatenate %194, %210, %226, %242 in 1 : vector<8x8xf32>, vector<8x8xf32>, vector<8x8xf32>, vector<8x8xf32> -> vector<8x32xf32>
    %c1_112 = arith.constant 1 : index
    %c0_113 = arith.constant 0 : index
    %c0_114 = arith.constant 0 : index
    %244 = vector.load %arg7[%c1_112, %c0_113, %c0_114] : memref<2x32x32xf32, #tpu.memory_space<vmem>>, vector<1x32x32xf32>
    %245 = vector.shape_cast %244 : vector<1x32x32xf32> to vector<32x32xf32>
    %cst_115 = arith.constant dense<0.000000e+00> : vector<8x32xf32>
    %246 = tpu.matmul %243, %245, %cst_115 {dimension_numbers = #tpu.dot_dimension_numbers<[1], [0], [0], [1], [0, 0, 1, 1], [], []>} : vector<8x32xf32>, vector<32x32xf32>, vector<8x32xf32> -> vector<8x32xf32>
    %c1_116 = arith.constant 1 : index
    %c0_117 = arith.constant 0 : index
    %c0_118 = arith.constant 0 : index
    %247 = vector.load %arg8[%c1_116, %c0_117, %c0_118] : memref<2x1x32xf32, #tpu.memory_space<vmem>>, vector<1x1x32xf32>
    %248 = vector.shape_cast %247 : vector<1x1x32xf32> to vector<1x32xf32>
    %249 = vector.broadcast %248 : vector<1x32xf32> to vector<8x32xf32>
    %250 = arith.addf %246, %249 : vector<8x32xf32>
    %251 = arith.addf %171, %250 : vector<8x32xf32>
    %c1_119 = arith.constant 1 : index
    %c0_120 = arith.constant 0 : index
    %c0_121 = arith.constant 0 : index
    %252 = vector.load %arg9[%c1_119, %c0_120, %c0_121] : memref<2x1x32xf32, #tpu.memory_space<vmem>>, vector<1x1x32xf32>
    %253 = vector.shape_cast %252 : vector<1x1x32xf32> to vector<1x32xf32>
    %c1_122 = arith.constant 1 : index
    %c0_123 = arith.constant 0 : index
    %c0_124 = arith.constant 0 : index
    %254 = vector.load %arg10[%c1_122, %c0_123, %c0_124] : memref<2x1x32xf32, #tpu.memory_space<vmem>>, vector<1x1x32xf32>
    %255 = vector.shape_cast %254 : vector<1x1x32xf32> to vector<1x32xf32>
    %cst_125 = arith.constant dense<0.000000e+00> : vector<8xf32>
    %256 = vector.multi_reduction <add>, %251, %cst_125 [1] : vector<8x32xf32> to vector<8xf32>
    %257 = vector.shape_cast %256 : vector<8xf32> to vector<8x1xf32>
    %cst_126 = arith.constant 3.200000e+01 : f32
    %258 = vector.broadcast %cst_126 : f32 to vector<8x1xf32>
    %259 = arith.divf %257, %258 : vector<8x1xf32>
    %260 = vector.broadcast %259 : vector<8x1xf32> to vector<8x32xf32>
    %261 = arith.subf %251, %260 : vector<8x32xf32>
    %262 = arith.mulf %261, %261 : vector<8x32xf32>
    %cst_127 = arith.constant dense<0.000000e+00> : vector<8xf32>
    %263 = vector.multi_reduction <add>, %262, %cst_127 [1] : vector<8x32xf32> to vector<8xf32>
    %264 = vector.shape_cast %263 : vector<8xf32> to vector<8x1xf32>
    %cst_128 = arith.constant 3.200000e+01 : f32
    %265 = vector.broadcast %cst_128 : f32 to vector<8x1xf32>
    %266 = arith.divf %264, %265 : vector<8x1xf32>
    %cst_129 = arith.constant 9.99999974E-6 : f32
    %267 = vector.broadcast %cst_129 : f32 to vector<8x1xf32>
    %268 = arith.addf %266, %267 : vector<8x1xf32>
    %269 = math.rsqrt %268 : vector<8x1xf32>
    %270 = vector.broadcast %269 : vector<8x1xf32> to vector<8x32xf32>
    %271 = arith.mulf %261, %270 : vector<8x32xf32>
    %272 = vector.broadcast %253 : vector<1x32xf32> to vector<8x32xf32>
    %273 = arith.mulf %271, %272 : vector<8x32xf32>
    %274 = vector.broadcast %255 : vector<1x32xf32> to vector<8x32xf32>
    %275 = arith.addf %273, %274 : vector<8x32xf32>
    %c1_130 = arith.constant 1 : index
    %c0_131 = arith.constant 0 : index
    %c0_132 = arith.constant 0 : index
    %276 = vector.load %arg11[%c1_130, %c0_131, %c0_132] : memref<2x32x64xf32, #tpu.memory_space<vmem>>, vector<1x32x64xf32>
    %277 = vector.shape_cast %276 : vector<1x32x64xf32> to vector<32x64xf32>
    %cst_133 = arith.constant dense<0.000000e+00> : vector<8x64xf32>
    %278 = tpu.matmul %275, %277, %cst_133 {dimension_numbers = #tpu.dot_dimension_numbers<[1], [0], [0], [1], [0, 0, 1, 1], [], []>} : vector<8x32xf32>, vector<32x64xf32>, vector<8x64xf32> -> vector<8x64xf32>
    %c1_134 = arith.constant 1 : index
    %c0_135 = arith.constant 0 : index
    %c0_136 = arith.constant 0 : index
    %279 = vector.load %arg12[%c1_134, %c0_135, %c0_136] : memref<2x1x64xf32, #tpu.memory_space<vmem>>, vector<1x1x64xf32>
    %280 = vector.shape_cast %279 : vector<1x1x64xf32> to vector<1x64xf32>
    %281 = vector.broadcast %280 : vector<1x64xf32> to vector<8x64xf32>
    %282 = arith.addf %278, %281 : vector<8x64xf32>
    %cst_137 = arith.constant 0.000000e+00 : f32
    %283 = vector.broadcast %cst_137 : f32 to vector<8x64xf32>
    %284 = arith.maximumf %282, %283 : vector<8x64xf32>
    %c1_138 = arith.constant 1 : index
    %c0_139 = arith.constant 0 : index
    %c0_140 = arith.constant 0 : index
    %285 = vector.load %arg13[%c1_138, %c0_139, %c0_140] : memref<2x64x32xf32, #tpu.memory_space<vmem>>, vector<1x64x32xf32>
    %286 = vector.shape_cast %285 : vector<1x64x32xf32> to vector<64x32xf32>
    %cst_141 = arith.constant dense<0.000000e+00> : vector<8x32xf32>
    %287 = tpu.matmul %284, %286, %cst_141 {dimension_numbers = #tpu.dot_dimension_numbers<[1], [0], [0], [1], [0, 0, 1, 1], [], []>} : vector<8x64xf32>, vector<64x32xf32>, vector<8x32xf32> -> vector<8x32xf32>
    %c1_142 = arith.constant 1 : index
    %c0_143 = arith.constant 0 : index
    %c0_144 = arith.constant 0 : index
    %288 = vector.load %arg14[%c1_142, %c0_143, %c0_144] : memref<2x1x32xf32, #tpu.memory_space<vmem>>, vector<1x1x32xf32>
    %289 = vector.shape_cast %288 : vector<1x1x32xf32> to vector<1x32xf32>
    %290 = vector.broadcast %289 : vector<1x32xf32> to vector<8x32xf32>
    %291 = arith.addf %287, %290 : vector<8x32xf32>
    %292 = arith.addf %275, %291 : vector<8x32xf32>
    %c1_145 = arith.constant 1 : index
    %c0_146 = arith.constant 0 : index
    %c0_147 = arith.constant 0 : index
    %293 = vector.load %arg15[%c1_145, %c0_146, %c0_147] : memref<2x1x32xf32, #tpu.memory_space<vmem>>, vector<1x1x32xf32>
    %294 = vector.shape_cast %293 : vector<1x1x32xf32> to vector<1x32xf32>
    %c1_148 = arith.constant 1 : index
    %c0_149 = arith.constant 0 : index
    %c0_150 = arith.constant 0 : index
    %295 = vector.load %arg16[%c1_148, %c0_149, %c0_150] : memref<2x1x32xf32, #tpu.memory_space<vmem>>, vector<1x1x32xf32>
    %296 = vector.shape_cast %295 : vector<1x1x32xf32> to vector<1x32xf32>
    %cst_151 = arith.constant dense<0.000000e+00> : vector<8xf32>
    %297 = vector.multi_reduction <add>, %292, %cst_151 [1] : vector<8x32xf32> to vector<8xf32>
    %298 = vector.shape_cast %297 : vector<8xf32> to vector<8x1xf32>
    %cst_152 = arith.constant 3.200000e+01 : f32
    %299 = vector.broadcast %cst_152 : f32 to vector<8x1xf32>
    %300 = arith.divf %298, %299 : vector<8x1xf32>
    %301 = vector.broadcast %300 : vector<8x1xf32> to vector<8x32xf32>
    %302 = arith.subf %292, %301 : vector<8x32xf32>
    %303 = arith.mulf %302, %302 : vector<8x32xf32>
    %cst_153 = arith.constant dense<0.000000e+00> : vector<8xf32>
    %304 = vector.multi_reduction <add>, %303, %cst_153 [1] : vector<8x32xf32> to vector<8xf32>
    %305 = vector.shape_cast %304 : vector<8xf32> to vector<8x1xf32>
    %cst_154 = arith.constant 3.200000e+01 : f32
    %306 = vector.broadcast %cst_154 : f32 to vector<8x1xf32>
    %307 = arith.divf %305, %306 : vector<8x1xf32>
    %cst_155 = arith.constant 9.99999974E-6 : f32
    %308 = vector.broadcast %cst_155 : f32 to vector<8x1xf32>
    %309 = arith.addf %307, %308 : vector<8x1xf32>
    %310 = math.rsqrt %309 : vector<8x1xf32>
    %311 = vector.broadcast %310 : vector<8x1xf32> to vector<8x32xf32>
    %312 = arith.mulf %302, %311 : vector<8x32xf32>
    %313 = vector.broadcast %294 : vector<1x32xf32> to vector<8x32xf32>
    %314 = arith.mulf %312, %313 : vector<8x32xf32>
    %315 = vector.broadcast %296 : vector<1x32xf32> to vector<8x32xf32>
    %316 = arith.addf %314, %315 : vector<8x32xf32>
    %c0_156 = arith.constant 0 : index
    %c0_157 = arith.constant 0 : index
    %317 = vector.load %arg17[%c0_156, %c0_157] : memref<1x32xf32, #tpu.memory_space<vmem>>, vector<1x32xf32>
    %c0_158 = arith.constant 0 : index
    %c0_159 = arith.constant 0 : index
    %318 = vector.load %arg18[%c0_158, %c0_159] : memref<1x32xf32, #tpu.memory_space<vmem>>, vector<1x32xf32>
    %cst_160 = arith.constant dense<0.000000e+00> : vector<8xf32>
    %319 = vector.multi_reduction <add>, %316, %cst_160 [1] : vector<8x32xf32> to vector<8xf32>
    %320 = vector.shape_cast %319 : vector<8xf32> to vector<8x1xf32>
    %cst_161 = arith.constant 3.200000e+01 : f32
    %321 = vector.broadcast %cst_161 : f32 to vector<8x1xf32>
    %322 = arith.divf %320, %321 : vector<8x1xf32>
    %323 = vector.broadcast %322 : vector<8x1xf32> to vector<8x32xf32>
    %324 = arith.subf %316, %323 : vector<8x32xf32>
    %325 = arith.mulf %324, %324 : vector<8x32xf32>
    %cst_162 = arith.constant dense<0.000000e+00> : vector<8xf32>
    %326 = vector.multi_reduction <add>, %325, %cst_162 [1] : vector<8x32xf32> to vector<8xf32>
    %327 = vector.shape_cast %326 : vector<8xf32> to vector<8x1xf32>
    %cst_163 = arith.constant 3.200000e+01 : f32
    %328 = vector.broadcast %cst_163 : f32 to vector<8x1xf32>
    %329 = arith.divf %327, %328 : vector<8x1xf32>
    %cst_164 = arith.constant 9.99999974E-6 : f32
    %330 = vector.broadcast %cst_164 : f32 to vector<8x1xf32>
    %331 = arith.addf %329, %330 : vector<8x1xf32>
    %332 = math.rsqrt %331 : vector<8x1xf32>
    %333 = vector.broadcast %332 : vector<8x1xf32> to vector<8x32xf32>
    %334 = arith.mulf %324, %333 : vector<8x32xf32>
    %335 = vector.broadcast %317 : vector<1x32xf32> to vector<8x32xf32>
    %336 = arith.mulf %334, %335 : vector<8x32xf32>
    %337 = vector.broadcast %318 : vector<1x32xf32> to vector<8x32xf32>
    %338 = arith.addf %336, %337 : vector<8x32xf32>
    %c0_165 = arith.constant 0 : index
    %c0_166 = arith.constant 0 : index
    %339 = vector.load %arg19[%c0_165, %c0_166] : memref<32x8xf32, #tpu.memory_space<vmem>>, vector<32x8xf32>
    %340 = vector.extract_strided_slice %338 {offsets = [0, 0], sizes = [4, 32], strides = [1, 1]} : vector<8x32xf32> to vector<4x32xf32>
    %cst_167 = arith.constant dense<0.000000e+00> : vector<8x4xf32>
    %341 = tpu.matmul %339, %340, %cst_167 {dimension_numbers = #tpu.dot_dimension_numbers<[0], [1], [1], [0], [0, 1, 1, 0], [], []>} : vector<32x8xf32>, vector<4x32xf32>, vector<8x4xf32> -> vector<8x4xf32>
    %c0_168 = arith.constant 0 : index
    %c0_169 = arith.constant 0 : index
    %342 = vector.load %arg20[%c0_168, %c0_169] : memref<8x1xf32, #tpu.memory_space<vmem>>, vector<8x1xf32>
    %343 = vector.broadcast %342 : vector<8x1xf32> to vector<8x4xf32>
    %344 = arith.addf %341, %343 : vector<8x4xf32>
    %345 = vector.broadcast %15 : vector<1x4xf32> to vector<8x4xf32>
    %346 = arith.mulf %344, %345 : vector<8x4xf32>
    %347 = vector.broadcast %5 : vector<1x4xf32> to vector<8x4xf32>
    %348 = arith.addf %346, %347 : vector<8x4xf32>
    %c0_170 = arith.constant 0 : index
    %c0_171 = arith.constant 0 : index
    %c0_172 = arith.constant 0 : index
    %349 = vector.load %arg21[%c0_170, %c0_171, %c0_172] : memref<1x8x4xf32, #tpu.memory_space<vmem>>, vector<1x8x4xf32>
    %350 = vector.shape_cast %349 : vector<1x8x4xf32> to vector<8x4xf32>
    %351 = vector.shape_cast %348 : vector<8x4xf32> to vector<1x8x4xf32>
    tpu.vector_store %arg21[%c0_170, %c0_171, %c0_172], %351 {strides = array<i32>} : memref<1x8x4xf32, #tpu.memory_space<vmem>>, vector<1x8x4xf32>,
    return
  }
  func.func @transform_0(%arg0: i32) -> (i32, i32, i32) {
    %c0_i32 = arith.constant 0 : i32
    %c0_i32_0 = arith.constant 0 : i32
    %c0_i32_1 = arith.constant 0 : i32
    return %arg0, %c0_i32, %c0_i32_0 : i32, i32, i32
  }
  func.func @transform_1(%arg0: i32) -> (i32, i32, i32) {
    %c0_i32 = arith.constant 0 : i32
    %c0_i32_0 = arith.constant 0 : i32
    %c0_i32_1 = arith.constant 0 : i32
    return %arg0, %c0_i32, %c0_i32_0 : i32, i32, i32
  }
  func.func @transform_2(%arg0: i32) -> (i32, i32) {
    %c0_i32 = arith.constant 0 : i32
    %c0_i32_0 = arith.constant 0 : i32
    %c0_i32_1 = arith.constant 0 : i32
    return %c0_i32, %c0_i32_0 : i32, i32
  }
  func.func @transform_3(%arg0: i32) -> (i32, i32) {
    %c0_i32 = arith.constant 0 : i32
    %c0_i32_0 = arith.constant 0 : i32
    %c0_i32_1 = arith.constant 0 : i32
    return %c0_i32, %c0_i32_0 : i32, i32
  }
  func.func @transform_4(%arg0: i32) -> (i32, i32, i32) {
    %c0_i32 = arith.constant 0 : i32
    %c0_i32_0 = arith.constant 0 : i32
    %c0_i32_1 = arith.constant 0 : i32
    %c0_i32_2 = arith.constant 0 : i32
    return %c0_i32, %c0_i32_0, %c0_i32_1 : i32, i32, i32
  }
  func.func @transform_5(%arg0: i32) -> (i32, i32, i32) {
    %c0_i32 = arith.constant 0 : i32
    %c0_i32_0 = arith.constant 0 : i32
    %c0_i32_1 = arith.constant 0 : i32
    %c0_i32_2 = arith.constant 0 : i32
    return %c0_i32, %c0_i32_0, %c0_i32_1 : i32, i32, i32
  }
  func.func @transform_6(%arg0: i32) -> (i32, i32, i32) {
    %c0_i32 = arith.constant 0 : i32
    %c0_i32_0 = arith.constant 0 : i32
    %c0_i32_1 = arith.constant 0 : i32
    %c0_i32_2 = arith.constant 0 : i32
    return %c0_i32, %c0_i32_0, %c0_i32_1 : i32, i32, i32
  }
  func.func @transform_7(%arg0: i32) -> (i32, i32, i32) {
    %c0_i32 = arith.constant 0 : i32
    %c0_i32_0 = arith.constant 0 : i32
    %c0_i32_1 = arith.constant 0 : i32
    %c0_i32_2 = arith.constant 0 : i32
    return %c0_i32, %c0_i32_0, %c0_i32_1 : i32, i32, i32
  }
  func.func @transform_8(%arg0: i32) -> (i32, i32, i32) {
    %c0_i32 = arith.constant 0 : i32
    %c0_i32_0 = arith.constant 0 : i32
    %c0_i32_1 = arith.constant 0 : i32
    %c0_i32_2 = arith.constant 0 : i32
    return %c0_i32, %c0_i32_0, %c0_i32_1 : i32, i32, i32
  }
  func.func @transform_9(%arg0: i32) -> (i32, i32, i32) {
    %c0_i32 = arith.constant 0 : i32
    %c0_i32_0 = arith.constant 0 : i32
    %c0_i32_1 = arith.constant 0 : i32
    %c0_i32_2 = arith.constant 0 : i32
    return %c0_i32, %c0_i32_0, %c0_i32_1 : i32, i32, i32
  }
  func.func @transform_10(%arg0: i32) -> (i32, i32, i32) {
    %c0_i32 = arith.constant 0 : i32
    %c0_i32_0 = arith.constant 0 : i32
    %c0_i32_1 = arith.constant 0 : i32
    %c0_i32_2 = arith.constant 0 : i32
    return %c0_i32, %c0_i32_0, %c0_i32_1 : i32, i32, i32
  }
  func.func @transform_11(%arg0: i32) -> (i32, i32, i32) {
    %c0_i32 = arith.constant 0 : i32
    %c0_i32_0 = arith.constant 0 : i32
    %c0_i32_1 = arith.constant 0 : i32
    %c0_i32_2 = arith.constant 0 : i32
    return %c0_i32, %c0_i32_0, %c0_i32_1 : i32, i32, i32
  }
  func.func @transform_12(%arg0: i32) -> (i32, i32, i32) {
    %c0_i32 = arith.constant 0 : i32
    %c0_i32_0 = arith.constant 0 : i32
    %c0_i32_1 = arith.constant 0 : i32
    %c0_i32_2 = arith.constant 0 : i32
    return %c0_i32, %c0_i32_0, %c0_i32_1 : i32, i32, i32
  }
  func.func @transform_13(%arg0: i32) -> (i32, i32, i32) {
    %c0_i32 = arith.constant 0 : i32
    %c0_i32_0 = arith.constant 0 : i32
    %c0_i32_1 = arith.constant 0 : i32
    %c0_i32_2 = arith.constant 0 : i32
    return %c0_i32, %c0_i32_0, %c0_i32_1 : i32, i32, i32
  }
  func.func @transform_14(%arg0: i32) -> (i32, i32, i32) {
    %c0_i32 = arith.constant 0 : i32
    %c0_i32_0 = arith.constant 0 : i32
    %c0_i32_1 = arith.constant 0 : i32
    %c0_i32_2 = arith.constant 0 : i32
    return %c0_i32, %c0_i32_0, %c0_i32_1 : i32, i32, i32
  }
  func.func @transform_15(%arg0: i32) -> (i32, i32, i32) {
    %c0_i32 = arith.constant 0 : i32
    %c0_i32_0 = arith.constant 0 : i32
    %c0_i32_1 = arith.constant 0 : i32
    %c0_i32_2 = arith.constant 0 : i32
    return %c0_i32, %c0_i32_0, %c0_i32_1 : i32, i32, i32
  }
  func.func @transform_16(%arg0: i32) -> (i32, i32) {
    %c0_i32 = arith.constant 0 : i32
    %c0_i32_0 = arith.constant 0 : i32
    %c0_i32_1 = arith.constant 0 : i32
    return %c0_i32, %c0_i32_0 : i32, i32
  }
  func.func @transform_17(%arg0: i32) -> (i32, i32) {
    %c0_i32 = arith.constant 0 : i32
    %c0_i32_0 = arith.constant 0 : i32
    %c0_i32_1 = arith.constant 0 : i32
    return %c0_i32, %c0_i32_0 : i32, i32
  }
  func.func @transform_18(%arg0: i32) -> (i32, i32) {
    %c0_i32 = arith.constant 0 : i32
    %c0_i32_0 = arith.constant 0 : i32
    %c0_i32_1 = arith.constant 0 : i32
    return %c0_i32, %c0_i32_0 : i32, i32
  }
  func.func @transform_19(%arg0: i32) -> (i32, i32) {
    %c0_i32 = arith.constant 0 : i32
    %c0_i32_0 = arith.constant 0 : i32
    %c0_i32_1 = arith.constant 0 : i32
    return %c0_i32, %c0_i32_0 : i32, i32
  }
  func.func @transform_20(%arg0: i32) -> (i32, i32, i32) {
    %c0_i32 = arith.constant 0 : i32
    %c0_i32_0 = arith.constant 0 : i32
    %c0_i32_1 = arith.constant 0 : i32
    return %arg0, %c0_i32, %c0_i32_0 : i32, i32, i32
  }
}

</mosaic_0001>

<bundles_post_ra>
// kernel: pallas_model_forward.1
= control target key start
LH: loop header
LB: loop body
LE: loop exit
PB: predicated region body
PF: predicated region fallthrough
CT: control target
= control target key end

     0   :  { %s4425_s0 = inlined_call_operand.vmem [shape: f32[2,16,4], index: 0, kind: input, shape index: {}]   ;;  %s4426_s1 = inlined_call_operand.vmem [shape: f32[2,16,4], index: 1, kind: input, shape index: {}]   ;;  %s4427_s2 = inlined_call_operand.vmem [shape: f32[16,32], index: 2, kind: input, shape index: {}]   ;;  %s4428_s3 = inlined_call_operand.vmem [shape: f32[1,32], index: 3, kind: input, shape index: {}]   ;;  %s4429_s4 = inlined_call_operand.vmem [shape: f32[2,32,96], index: 4, kind: input, shape index: {}]   ;;  %s4430_s5 = inlined_call_operand.vmem [shape: f32[2,1,96], index: 5, kind: input, shape index: {}]   ;;  %s4431_s6 = inlined_call_operand.vmem [shape: f32[2,32,32], index: 6, kind: input, shape index: {}]   ;;  %s4432_s7 = inlined_call_operand.vmem [shape: f32[2,1,32], index: 7, kind: input, shape index: {}]   ;;  %s4433_s8 = inlined_call_operand.vmem [shape: f32[2,1,32], index: 8, kind: input, shape index: {}]   ;;  %s4434_s9 = inlined_call_operand.vmem [shape: f32[2,1,32], index: 9, kind: input, shape index: {}]   ;;  %s4435_s10 = inlined_call_operand.vmem [shape: f32[2,32,64], index: 10, kind: input, shape index: {}]   ;;  %s4436_s11 = inlined_call_operand.vmem [shape: f32[2,1,64], index: 11, kind: input, shape index: {}]   ;;  %s4437_s12 = inlined_call_operand.vmem [shape: f32[2,64,32], index: 12, kind: input, shape index: {}]   ;;  %s4438_s13 = inlined_call_operand.vmem [shape: f32[2,1,32], index: 13, kind: input, shape index: {}]   ;;  %s4439_s14 = inlined_call_operand.vmem [shape: f32[2,1,32], index: 14, kind: input, shape index: {}]   ;;  %s4440_s15 = inlined_call_operand.vmem [shape: f32[2,1,32], index: 15, kind: input, shape index: {}]   ;;  %s4441_s16 = inlined_call_operand.vmem [shape: f32[1,32], index: 16, kind: input, shape index: {}]   ;;  %s4442_s17 = inlined_call_operand.vmem [shape: f32[1,32], index: 17, kind: input, shape index: {}]   ;;  %s4443_s18 = inlined_call_operand.vmem [shape: f32[32,8], index: 18, kind: input, shape index: {}]   ;;  %s4444_s19 = inlined_call_operand.vmem [shape: f32[8,1], index: 19, kind: input, shape index: {}]   ;;  %s4445_s20 = inlined_call_operand.vmem [shape: f32[2,8,4], index: 20, kind: output, shape index: {}]  }
   0x1   :  { %4460 = sst [smem:[#allocation2_spill]] %s4425_s0 }
   0x2   :  { %4461 = sst [smem:[#allocation3_spill]] %s4426_s1  ;;  %s3964_s1 = smov 0  }
   0x3   :  { %4462 = sst [smem:[#allocation4_spill]] %s4427_s2 }
   0x4   :  { %4463 = sst [smem:[#allocation5_spill]] %s4428_s3 }
   0x5   :  { %4464 = sst [smem:[#allocation6_spill]] %s4429_s4 }
   0x6 LB: > { %s3305_s22 = sadd.s32 4294967295, %s3839_s1   ;;  %p3309_p0 = scmp.ge.s32.totalorder %s3839_s1, 1  ;;  %s3839_s1 = sphi %s3964_s1, %s30_s1  }
   0x7   : > { %p572_p1 = scmp.lt.s32.totalorder %s3839_s1, 3 }
   0x9   : > { %p573_p2 = pnand %p3309_p0, %p572_p1 }
   0xa   : > { %p634_p3 = scmp.lt.s32.totalorder (!%p573_p2), %s3305_s22, 1  ;;  %s4465_s2 = sld [smem:[#allocation4_spill]] (!%p573_p2)  ;;  %v3841_v2 = vmov (!%p573_p2), 0.0|0.0   ;;  %vm3842_vm0 = vmmov (!%p573_p2), 0   ;;  %v3843_v4 = vmov (!%p573_p2), 0.0   ;;  %vm650_vm1 = vcmask (!%p573_p2), 31744  }
   0xb   : > { %576 = sbr.rel (%p573_p2) target bundleno = 5924 (0x1724), region = 100  ;;  %3693 = vmatprep.subr.bf16.mxu1 (!%p573_p2), %v3841_v2  ;;  %3699 = vmatprep.subr.bf16.mxu0 (!%p573_p2), %v3841_v2  ;;  %s4466_s4 = sld [smem:[#allocation2_spill]] (!%p573_p2)  ;;  %vm721_vm4 = vcmask (!%p573_p2), 130048   ;;  %vm905_vm5 = vcmask (!%p573_p2), 1043456   ;;  %vm926_vm6 = vcmask (!%p573_p2), 261120   ;;  %vm1003_vm7 = vcmask (!%p573_p2), 64512  }
   0xc   : > { %3494 = vmatprep.mubr.msk.f32.mxu1 (!%p573_p2), %vm3842_vm0, %v3843_v4  ;;  %3512 = vmatprep.mubr.msk.f32.mxu0 (!%p573_p2), %vm3842_vm0, %v3843_v4  ;;  %s4467_s21 = sld [smem:[#allocation3_spill]] (!%p573_p2)  ;;  %s4468_s3 = sld [smem:[#allocation6_spill]] (!%p573_p2)  ;;  %v3318_v58 = vld [vmem:[%s4430_s5] ss:$0 sm:$0xff] (!%p573_p2)  ;;  %vm1678_vm8 = vcmask (!%p573_p2), 195584   ;;  %vm1895_vm9 = vcmask (!%p573_p2), 523264  }
   0xd   : > { %s3845_s27 = smov (!%p573_p2), 96   ;;  %s4459_s28 = smov (!%p573_p2), 120  }
   0xe   : > { %s4454_s30 = smov (!%p573_p2), 112   ;;  %s4452_s0 = smov (!%p573_p2), 104  }
   0xf   : > { %s4449_s24 = smov (!%p573_p2), 40   ;;  %s4448_s25 = smov (!%p573_p2), 56  }
  0x10   : > { %v687_v0 = vld [vmem:[%s4465_s2] sm:$0xff] (!%p573_p2)  ;;  %v688_v1 = vld [vmem:[%s4465_s2 + $0x8] sm:$0xff] (!%p573_p2) }
  0x11   : > { %v3694_v3 = vpack.c.bf16 (!%p573_p2), %v688_v1, %v687_v0 }
  0x12   : > { %s4483_s22 = smov (!%p634_p3, %s3305_s22), 1  ;;  %v915_v44 = vld [vmem:[%s4468_s3] sm:$0xff]  ;;  %v916_v45 = vld [vmem:[%s4468_s3 + $0x8] sm:$0xff]  ;;  %v917_v47 = vld [vmem:[%s4468_s3 + $0x10] sm:$0xff] }
  0x13   : > { %3695 = vmatpush3.bf16.msra.mxu1 %v3694_v3  ;;  %s3400_s26 = sshll.u32 %s4483_s22, 4  ;;  %v3700_v46 = vpack.c.bf16 %v916_v45, %v915_v44  ;;  %v918_v48 = vld [vmem:[%s4468_s3 + $0x18] sm:$0xff] }
  0x14   : > { %3696 = vmatprep.subr.bf16.mxu1 %v3841_v2  ;;  %s638_s29 = scalar_lea.vmem %s4466_s4, %s3400_s26  ;;  %s643_s23 = scalar_lea.vmem %s4467_s21, %s3400_s26  ;;  %v3703_v49 = vpack.c.bf16 %v918_v48, %v917_v47 }
  0x15   : > { %v648_v5 = vld [vmem:[%s638_s29] sm:$0xff]  ;;  %v649_v6 = vld [vmem:[%s638_s29 + $0x8] sm:$0xff]  ;;  %3701 = vmatpush3.bf16.msra.mxu0 %v3700_v46  ;;  %s3844_s26 = smov 88   ;;  %s4453_s4 = smov 72  }
  0x16   : > { %v651_v7 = vsel %vm650_vm1, %v648_v5, 0.0  ;;  %v652_v8 = vsel %vm650_vm1, %v649_v6, 0.0  ;;  %v795_v9 = vld [vmem:[%s643_s23] sm:$0xff]  ;;  %v796_v11 = vld [vmem:[%s643_s23 + $0x8] sm:$0xff]  ;;  %3702 = vmatprep.subr.bf16.mxu0 %v3841_v2  ;;  %s4469_s23 = sld [smem:[#allocation5_spill]]  ;;  %s4455_s29 = smov 80  }
  0x17   : > { %v653_v10 = vadd.f32 %v652_v8, %v651_v7  ;;  %797 = vxpose.xlu1.b32.start [1/2] (short) (narrow) %v795_v9, 8  ;;  %s4451_s21 = smov 64  }
  0x19   : > { %v654_v12 = vrot.slane %v653_v10, 4  ;;  %3704 = vmatpush3.bf16.msra.mxu0 %v3703_v49 }
  0x1a   : > { %3525 = vmatprep.subr.mxu0 %v3843_v4 }
  0x1b   : > { %v655_v13 = vadd.f32 %v654_v12, %v653_v10  ;;  %798 = vxpose.xlu1.b32.end [2/2] (short) (narrow) %v796_v11, 8 }
  0x1c   : > { %v3317_v54 = vld [vmem:[%s4469_s23] ss:$0 sm:$0xff]  ;;  %s4450_s23 = smov 48  }
  0x1d   : > { %v656_v14 = vrot.slane %v655_v13, 2 }
  0x1f   : > { %v657_v15 = vadd.f32 %v656_v14, %v655_v13 }
  0x21   : > { %v658_v16 = vrot.slane %v657_v15, 1 }
  0x23   : > { %v659_v17 = vadd.f32 %v658_v16, %v657_v15 }
  0x25   : > { %v3996_v18 = vmul.f32 0.0625, %v659_v17 }
  0x27   : > { %v662_v19 = vsub.f32 %v648_v5, %v3996_v18  ;;  %v663_v20 = vsub.f32 %v649_v6, %v3996_v18 }
  0x29   : > { %v664_v21 = vmul.f32 %v662_v19, %v662_v19  ;;  %v665_v22 = vmul.f32 %v663_v20, %v663_v20 }
  0x2b   : > { %v666_v23 = vsel %vm650_vm1, %v664_v21, 0.0  ;;  %v667_v24 = vsel %vm650_vm1, %v665_v22, 0.0 }
  0x2c   : > { %v668_v25 = vadd.f32 %v667_v24, %v666_v23 }
  0x2e   : > { %v669_v26 = vrot.slane %v668_v25, 4 }
  0x30   : > { %v670_v27 = vadd.f32 %v669_v26, %v668_v25 }
  0x32   : > { %v671_v28 = vrot.slane %v670_v27, 2 }
  0x34   : > { %v672_v29 = vadd.f32 %v671_v28, %v670_v27 }
  0x36   : > { %v673_v30 = vrot.slane %v672_v29, 1 }
  0x38   : > { %v674_v31 = vadd.f32 %v673_v30, %v672_v29 }
  0x3a   : > { %v675_v32 = vmul.f32 0.0625, %v674_v31 }
  0x3c   : > { %v676_v33 = vadd.f32 1e-05, %v675_v32 }
  0x3e   : > { %3787 = vrsqrt.f32 %v676_v33  ;;  %vm679_vm2 = vcmp.eq.f32.partialorder %v676_v33, inf  ;;  %v682_v35 = vand.u32 2147483648, %v676_v33  ;;  %vm681_vm3 = vcmp.eq.f32.partialorder %v676_v33, 0.0 }
  0x48   : > { %v3788_v34 = vpop.eup %3787 }
  0x49   : > { %v678_v36 = vmul.f32 %v3788_v34, %v676_v33 }
  0x4b   : > { %v680_v37 = vsel %vm679_vm2, %v676_v33, %v678_v36 }
  0x4c   : > { %v4002_v38 = vsel %vm681_vm3, %v682_v35, %v680_v37 }
  0x4d   : > { %3789 = vrcp.f32 %v4002_v38 }
  0x57   : > { %v3790_v39 = vpop.eup %3789 }
  0x58   : > { %v685_v40 = vmul.f32 %v3790_v39, %v662_v19  ;;  %v686_v41 = vmul.f32 %v3790_v39, %v663_v20 }
  0x5a   : > { %689 = vxpose.xlu0.b32.start [1/2] (short) (narrow) %v685_v40, 8 }
  0x5e   : > { %690 = vxpose.xlu0.b32.end [2/2] (short) (narrow) %v686_v41, 8 }
  0x97   : > { %v813_v43 = vpop.trf.xlu1 }
  0xda   : > { %v705_v42 = vpop.trf.xlu0 }
  0xdb   : > { %3495 = vmatmul.mubr.msk.f32.vlgmr.msra.gmra.mrb[0].mxu1 %vm721_vm4, %v705_v42 }
  0xdc   : > { %3698 = vmatpush3.bf16.msra.mxu1 %v3694_v3  ;;  %3501 = vmatprep.mubr.msk.f32.mxu1 %vm3842_vm0, %v3843_v4 }
  0xdd   : > { %3515 = vmatprep.subr.mxu1 %v3843_v4 }
  0xdf   : > { %3502 = vmatmul.mubr.msk.f32.vlgmr.msra.gmra.mrb[2].mxu1 %vm721_vm4, %v813_v43 }
  0xe0   : > { %3517 = vmatprep.mubr.msk.f32.mxu1 %vm3842_vm0, %v3843_v4 }
 0x1ae   : > { %v791_v50 = vpop.f32.mrb[0].mxu1 }
 0x1af   : > { %v3496_v51 = vpop.f32.mrb[1].mxu1 }
 0x1b2   : > { %v898_v52 = vpop.f32.mrb[2].mxu1 }
 0x1b3   : > { %v903_v53 = vrot.slane %v898_v52, 4  ;;  %v3503_v55 = vpop.f32.mrb[3].mxu1 }
 0x1b5   : > { %v906_v56 = vsel %vm905_vm5, %v791_v50, %v903_v53 }
 0x1b6   : > { %v4029_v57 = vadd.f32 %v3317_v54, %v906_v56 }
 0x1b8   : > { %3513 = vmatmul.mubr.msk.f32.vlgmr.msra.gmra.mrb[0].mxu0 %vm926_vm6, %v4029_v57 }
 0x1b9   : > { %3527 = vmatprep.mubr.msk.f32.mxu0 %vm3842_vm0, %v3843_v4 }
 0x28b   : > { %v996_v59 = vpop.f32.mrb[0].mxu0 }
 0x28c   : > { %v4038_v60 = vadd.f32 %v3318_v58, %v996_v59  ;;  %v3514_v61 = vpop.f32.mrb[1].mxu0 }
 0x28e   : > { %1168 = vrot.lane.b32.xlu1 %v4038_v60, %s3844_s26  ;;  %1001 = vrot.lane.b32.xlu0 %v4038_v60, %s3845_s27 }
 0x292   : > { %1166 = vrot.lane.b32.xlu1 %v4038_v60, %s4459_s28  ;;  %1500 = vrot.lane.b32.xlu0 %v4038_v60, %s4453_s4  ;;  %s4456_s4 = smov 24   ;;  %s4473_s28 = smov 72  }
 0x296   : > { %1334 = vrot.lane.b32.xlu1 %v4038_v60, %s4455_s29  ;;  %s4471_s29 = smov 80  }
 0x29a   : > { %1332 = vrot.lane.b32.xlu1 %v4038_v60, %s4454_s30  ;;  %s4474_s30 = smov 104  }
 0x29e   : > { %1498 = vrot.lane.b32.xlu1 %v4038_v60, %s4452_s0 }
 0x300   : > { %v1169_v62 = vpop.permute.xlu1 %1168  ;;  %v1002_v63 = vpop.permute.xlu0 %1001 }
 0x301   : > { %3516 = vmatpush3.xpose.msk.msra.mxu1 %vm1003_vm7, %v1002_v63  ;;  %3526 = vmatpush3.xpose.msk.msra.mxu0 %vm1003_vm7, %v1169_v62  ;;  %v1680_v62 = vld [vmem:[%s4431_s6] sm:$0xff]  ;;  %v1681_v63 = vld [vmem:[%s4431_s6 + $0x8] sm:$0xff] }
 0x302   : > { %3535 = vmatprep.subr.mxu0 %v3843_v4  ;;  %3520 = vmatprep.subr.mxu1 %v3843_v4 }
 0x304   : > { %v1167_v0 = vpop.permute.xlu1 %1166  ;;  %3518 = vmatmul.mubr.msk.f32.vlgmr.msra.gmra.mrb[4].mxu1 %vm1003_vm7, %v4038_v60  ;;  %v1501_v5 = vpop.permute.xlu0 %1500 }
 0x305   : > { %3528 = vmatmul.mubr.msk.f32.vlgmr.msra.gmra.mrb[2].mxu0 %vm1003_vm7, %v1167_v0  ;;  %3522 = vmatprep.mubr.msk.f32.mxu1 %vm3842_vm0, %v3843_v4  ;;  %v3706_v0 = vpack.c.bf16 %v1681_v63, %v1680_v62 }
 0x306   : > { %3537 = vmatprep.mubr.msk.f32.mxu0 %vm3842_vm0, %v3843_v4 }
 0x308   : > { %v1335_v1 = vpop.permute.xlu1 %1334 }
 0x309   : > { %3536 = vmatpush3.xpose.msk.msra.mxu0 %vm1003_vm7, %v1335_v1  ;;  %v1682_v1 = vld [vmem:[%s4431_s6 + $0x10] sm:$0xff] }
 0x30a   : > { %3545 = vmatprep.subr.mxu0 %v3843_v4 }
 0x30c   : > { %v1333_v3 = vpop.permute.xlu1 %1332 }
 0x30d   : > { %3538 = vmatmul.mubr.msk.f32.vlgmr.msra.gmra.mrb[4].mxu0 %vm1003_vm7, %v1333_v3  ;;  %v1683_v3 = vld [vmem:[%s4431_s6 + $0x18] sm:$0xff] }
 0x30e   : > { %3546 = vmatpush3.xpose.msk.msra.mxu0 %vm1003_vm7, %v1501_v5  ;;  %3547 = vmatprep.mubr.msk.f32.mxu0 %vm3842_vm0, %v3843_v4  ;;  %v3709_v5 = vpack.c.bf16 %v1683_v3, %v1682_v1  ;;  %v3338_v1 = vld [vmem:[%s4438_s13] ss:$0 sm:$0xff] }
 0x30f   : > { %3705 = vmatprep.subr.bf16.mxu0 %v3841_v2 }
 0x310   : > { %v1499_v6 = vpop.permute.xlu1 %1498 }
 0x311   : > { %3548 = vmatmul.mubr.msk.f32.vlgmr.msra.gmra.mrb[6].mxu0 %vm1003_vm7, %v1499_v6 }
 0x312   : > { %3563 = vmatprep.mubr.msk.f32.mxu0 %vm3842_vm0, %v3843_v4  ;;  %3707 = vmatpush3.bf16.msra.mxu0 %v3706_v0 }
 0x313   : > { %3708 = vmatprep.subr.bf16.mxu0 %v3841_v2 }
 0x316   : > { %3710 = vmatpush3.bf16.msra.mxu0 %v3709_v5 }
 0x317   : > { %3717 = vmatprep.subr.bf16.mxu0 %v3841_v2 }
 0x3d7   : > { %v1074_v7 = vpop.f32.mrb[4].mxu1 }
 0x3d8   : > { %v1078_v8 = vmul.f32 0.35355338, %v1074_v7  ;;  %v3519_v9 = vpop.f32.mrb[5].mxu1  ;;  %v1240_v10 = vpop.f32.mrb[2].mxu0 }
 0x3d9   : > { %v1244_v11 = vmul.f32 0.35355338, %v1240_v10  ;;  %v3529_v12 = vpop.f32.mrb[3].mxu0 }
 0x3da   : > { %v1079_v13 = vsel %vm1003_vm7, %v1078_v8, -inf }
 0x3db   : > { %1080 = vmax.xlane.f32.xlu0 %v1079_v13  ;;  %v1245_v14 = vsel %vm1003_vm7, %v1244_v11, -inf }
 0x3dc   : > { %1246 = vmax.xlane.f32.xlu1 %v1245_v14 }
 0x3e0   : > { %v1406_v15 = vpop.f32.mrb[4].mxu0 }
 0x3e1   : > { %v1410_v16 = vmul.f32 0.35355338, %v1406_v15  ;;  %v3539_v17 = vpop.f32.mrb[5].mxu0 }
 0x3e3   : > { %v1411_v19 = vsel %vm1003_vm7, %v1410_v16, -inf }
 0x3e4   : > { %v1572_v20 = vpop.f32.mrb[6].mxu0  ;;  %1412 = vmax.xlane.f32.xlu0 %v1411_v19 }
 0x3e5   : > { %v1576_v21 = vmul.f32 0.35355338, %v1572_v20  ;;  %v3549_v22 = vpop.f32.mrb[7].mxu0 }
 0x3e7   : > { %v1577_v23 = vsel %vm1003_vm7, %v1576_v21, -inf }
 0x3e8   : > { %1578 = vmax.xlane.f32.xlu0 %v1577_v23 }
 0x3ed   : > { %1090 = vrot.lane.b32.xlu1 %v4038_v60, %s4451_s21  ;;  %s4458_s21 = smov 8  }
 0x468   : > { %v1081_v24 = vpop.xlane.xlu0 %1080 }
 0x469   : > { %v1082_v25 = vsub.f32 %v1078_v8, %v1081_v24  ;;  %v1247_v26 = vpop.xlane.xlu1 %1246 }
 0x46a   : > { %v1248_v27 = vsub.f32 %v1244_v11, %v1247_v26 }
 0x46b   : > { %v1083_v28 = vmul.f32 1.442695, %v1082_v25 }
 0x46c   : > { %v1249_v29 = vmul.f32 1.442695, %v1248_v27 }
 0x46d   : > { %3791 = vpow2.f32 %v1083_v28  ;;  %v1091_v30 = vpop.permute.xlu1 %1090 }
 0x46e   : > { %3793 = vpow2.f32 %v1249_v29  ;;  %3521 = vmatpush3.msra.mxu1 %v1091_v30 }
 0x46f   : > { %3530 = vmatprep.subr.mxu1 %v3843_v4 }
 0x471   : > { %v1413_v31 = vpop.xlane.xlu0 %1412 }
 0x472   : > { %v1414_v32 = vsub.f32 %v1410_v16, %v1413_v31 }
 0x474   : > { %v1415_v33 = vmul.f32 1.442695, %v1414_v32  ;;  %v1795_v32 = vld [vmem:[%s4435_s10] sm:$0xff] }
 0x475   : > { %v1579_v34 = vpop.xlane.xlu0 %1578 }
 0x476   : > { %3795 = vpow2.f32 %v1415_v33  ;;  %v1580_v35 = vsub.f32 %v1576_v21, %v1579_v34  ;;  %v3332_v21 = vld [vmem:[%s4432_s7] ss:$0 sm:$0xff]  ;;  %v1796_v33 = vld [vmem:[%s4435_s10 + $0x8] sm:$0xff] }
 0x477   : > { %v3792_v36 = vpop.eup %3791  ;;  %v3712_v34 = vpack.c.bf16 %v1796_v33, %v1795_v32 }
 0x478   : > { %v3794_v37 = vpop.eup %3793  ;;  %v1581_v39 = vmul.f32 1.442695, %v1580_v35  ;;  %v1085_v40 = vsel %vm1003_vm7, %v3792_v36, 0.0  ;;  %v1798_v35 = vld [vmem:[%s4435_s10 + $0x18] sm:$0xff] }
 0x479   : > { %1086 = vadd.xlane.f32.xlu1 %v1085_v40  ;;  %v1251_v41 = vsel %vm1003_vm7, %v3794_v37, 0.0  ;;  %v1882_v40 = vld [vmem:[%s4437_s12 + $0x10] sm:$0xff] }
 0x47a   : > { %3797 = vpow2.f32 %v1581_v39  ;;  %1252 = vadd.xlane.f32.xlu0 %v1251_v41  ;;  %v1881_v39 = vld [vmem:[%s4437_s12 + $0x8] sm:$0xff] }
 0x480   : > { %v3796_v42 = vpop.eup %3795 }
 0x481   : > { %v1417_v43 = vsel %vm1003_vm7, %v3796_v42, 0.0 }
 0x482   : > { %1418 = vadd.xlane.f32.xlu1 %v1417_v43 }
 0x484   : > { %v3798_v44 = vpop.eup %3797 }
 0x485   : > { %v1583_v45 = vsel %vm1003_vm7, %v3798_v44, 0.0 }
 0x486   : > { %1584 = vadd.xlane.f32.xlu0 %v1583_v45  ;;  %v1885_v45 = vld [vmem:[%s4437_s12 + $0x28] sm:$0xff] }
 0x493   : > { %1422 = vrot.lane.b32.xlu1 %v4038_v60, %s4450_s23  ;;  %s4457_s23 = smov 16  }
 0x497   : > { %1588 = vrot.lane.b32.xlu1 %v4038_v60, %s4449_s24 }
 0x49c   : > { %1256 = vrot.lane.b32.xlu0 %v4038_v60, %s4448_s25  ;;  %s4470_s25 = smov 120  }
 0x506   : > { %v1087_v46 = vpop.xlane.xlu1 %1086 }
 0x507   : > { %3799 = vrcp.f32 %v1087_v46  ;;  %v1253_v47 = vpop.xlane.xlu0 %1252 }
 0x508   : > { %3801 = vrcp.f32 %v1253_v47 }
 0x50f   : > { %v1419_v48 = vpop.xlane.xlu1 %1418 }
 0x510   : > { %3803 = vrcp.f32 %v1419_v48 }
 0x511   : > { %v3800_v49 = vpop.eup %3799 }
 0x512   : > { %v1089_v50 = vmul.f32 %v3800_v49, %v3792_v36  ;;  %v3802_v52 = vpop.eup %3801 }
 0x513   : > { %v1585_v51 = vpop.xlane.xlu0 %1584  ;;  %v1255_v53 = vmul.f32 %v3802_v52, %v3794_v37  ;;  %v1423_v54 = vpop.permute.xlu1 %1422  ;;  %v1880_v37 = vld [vmem:[%s4437_s12] sm:$0xff] }
 0x514   : > { %3805 = vrcp.f32 %v1585_v51  ;;  %3523 = vmatmul.mubr.msk.f32.vlgmr.msra.gmra.mrb[6].mxu1 %vm1003_vm7, %v1089_v50  ;;  %v3718_v41 = vpack.c.bf16 %v1881_v39, %v1880_v37  ;;  %v3334_v51 = vld [vmem:[%s4433_s8] ss:$0 sm:$0xff] }
 0x515   : > { %3532 = vmatprep.mubr.msk.f32.mxu1 %vm3842_vm0, %v3843_v4 }
 0x517   : > { %v1257_v55 = vpop.permute.xlu0 %1256  ;;  %v1589_v59 = vpop.permute.xlu1 %1588 }
 0x518   : > { %3531 = vmatpush3.msra.mxu1 %v1257_v55 }
 0x519   : > { %3533 = vmatmul.mubr.msk.f32.vlgmr.msra.gmra.mrb[8].mxu1 %vm1003_vm7, %v1255_v53  ;;  %3540 = vmatprep.subr.mxu1 %v3843_v4  ;;  %v3335_v53 = vld [vmem:[%s4434_s9] ss:$0 sm:$0xff] }
 0x51a   : > { %v3804_v56 = vpop.eup %3803  ;;  %3541 = vmatpush3.msra.mxu1 %v1423_v54  ;;  %3542 = vmatprep.mubr.msk.f32.mxu1 %vm3842_vm0, %v3843_v4 }
 0x51b   : > { %v1421_v58 = vmul.f32 %v3804_v56, %v3796_v42  ;;  %3550 = vmatprep.subr.mxu1 %v3843_v4  ;;  %v1883_v42 = vld [vmem:[%s4437_s12 + $0x18] sm:$0xff]  ;;  %v1886_v56 = vld [vmem:[%s4437_s12 + $0x30] sm:$0xff] }
 0x51c   : > { %v3721_v43 = vpack.c.bf16 %v1883_v42, %v1882_v40 }
 0x51d   : > { %3543 = vmatmul.mubr.msk.f32.vlgmr.msra.gmra.mrb[10].mxu1 %vm1003_vm7, %v1421_v58  ;;  %v1887_v58 = vld [vmem:[%s4437_s12 + $0x38] sm:$0xff] }
 0x51e   : > { %v3806_v60 = vpop.eup %3805  ;;  %3551 = vmatpush3.msra.mxu1 %v1589_v59  ;;  %3552 = vmatprep.mubr.msk.f32.mxu1 %vm3842_vm0, %v3843_v4  ;;  %v3727_v59 = vpack.c.bf16 %v1887_v58, %v1886_v56 }
 0x51f   : > { %v1587_v61 = vmul.f32 %v3806_v60, %v3798_v44  ;;  %3711 = vmatprep.subr.bf16.mxu1 %v3841_v2  ;;  %v1884_v44 = vld [vmem:[%s4437_s12 + $0x20] sm:$0xff] }
 0x520   : > { %v3724_v46 = vpack.c.bf16 %v1885_v45, %v1884_v44  ;;  %v3336_v60 = vld [vmem:[%s4436_s11] ss:$0 sm:$0xff] }
 0x521   : > { %3553 = vmatmul.mubr.msk.f32.vlgmr.msra.gmra.mrb[12].mxu1 %vm1003_vm7, %v1587_v61 }
 0x522   : > { %3574 = vmatprep.mubr.msk.f32.mxu1 %vm3842_vm0, %v3843_v4  ;;  %3713 = vmatpush3.bf16.msra.mxu1 %v3712_v34 }
 0x523   : > { %3714 = vmatprep.subr.bf16.mxu1 %v3841_v2 }
 0x5e7   : > { %v1162_v6 = vpop.f32.mrb[6].mxu1 }
 0x5e8   : > { %v3524_v7 = vpop.f32.mrb[7].mxu1 }
 0x5ec   : > { %v1328_v8 = vpop.f32.mrb[8].mxu1 }
 0x5ed   : > { %1665 = vrot.lane.b32.xlu0 %v1328_v8, %s4458_s21  ;;  %v3534_v9 = vpop.f32.mrb[9].mxu1  ;;  %s4477_s21 = smov 40  }
 0x5f0   : > { %v1494_v10 = vpop.f32.mrb[10].mxu1 }
 0x5f1   : > { %1669 = vrot.lane.b32.xlu1 %v1494_v10, %s4457_s23  ;;  %v3544_v11 = vpop.f32.mrb[11].mxu1  ;;  %s4478_s23 = smov 56  }
 0x5f4   : > { %v1660_v12 = vpop.f32.mrb[12].mxu1 }
 0x5f5   : > { %1673 = vrot.lane.b32.xlu0 %v1660_v12, %s4456_s4  ;;  %v3554_v13 = vpop.f32.mrb[13].mxu1  ;;  %s4472_s4 = smov 112  }
 0x65f   : > { %v1666_v14 = vpop.permute.xlu0 %1665 }
 0x660   : > { %v1676_v16 = vsel %vm1003_vm7, %v1162_v6, %v1666_v14  ;;  %v3342_v14 = vld [vmem:[%s4468_s3 + $0x20] sm:$0xff] }
 0x663   : > { %v1670_v15 = vpop.permute.xlu1 %1669 }
 0x664   : > { %v1677_v17 = vsel %vm721_vm4, %v1676_v16, %v1670_v15  ;;  %v3343_v15 = vld [vmem:[%s4468_s3 + $0x28] sm:$0xff] }
 0x665   : > { %v3730_v16 = vpack.c.bf16 %v3343_v15, %v3342_v14 }
 0x667   : > { %v1674_v19 = vpop.permute.xlu0 %1673 }
 0x668   : > { %v1679_v20 = vsel %vm1678_vm8, %v1677_v17, %v1674_v19  ;;  %v3344_v17 = vld [vmem:[%s4468_s3 + $0x30] sm:$0xff]  ;;  %v3345_v19 = vld [vmem:[%s4468_s3 + $0x38] sm:$0xff] }
 0x669   : > { %3564 = vmatmul.mubr.msk.f32.vlgmr.msra.gmra.mrb[8].mxu0 %vm926_vm6, %v1679_v20  ;;  %v3733_v20 = vpack.c.bf16 %v3345_v19, %v3344_v17 }
 0x66a   : > { %3593 = vmatprep.mubr.msk.f32.mxu0 %vm3842_vm0, %v3843_v4  ;;  %3719 = vmatpush3.bf16.msra.mxu0 %v3718_v41 }
 0x66b   : > { %3720 = vmatprep.subr.bf16.mxu0 %v3841_v2 }
 0x66e   : > { %3722 = vmatpush3.bf16.msra.mxu0 %v3721_v43 }
 0x66f   : > { %3723 = vmatprep.subr.bf16.mxu0 %v3841_v2 }
 0x672   : > { %3725 = vmatpush3.bf16.msra.mxu0 %v3724_v46 }
 0x673   : > { %3726 = vmatprep.subr.bf16.mxu0 %v3841_v2 }
 0x676   : > { %3728 = vmatpush3.bf16.msra.mxu0 %v3727_v59 }
 0x677   : > { %3617 = vmatprep.subr.mxu0 %v3843_v4 }
 0x73c   : > { %v1760_v22 = vpop.f32.mrb[8].mxu0 }
 0x73d   : > { %v1761_v23 = vadd.f32 %v3332_v21, %v1760_v22  ;;  %v3565_v24 = vpop.f32.mrb[9].mxu0 }
 0x73f   : > { %v1764_v25 = vadd.f32 %v1761_v23, %v4029_v57  ;;  %v1797_v57 = vld [vmem:[%s4435_s10 + $0x10] sm:$0xff] }
 0x740   : > { %v3715_v36 = vpack.c.bf16 %v1798_v35, %v1797_v57 }
 0x741   : > { %v1767_v26 = vsel %vm926_vm6, %v1764_v25, 0.0 }
 0x742   : > { %1768 = vadd.xlane.f32.xlu1 %v1767_v26  ;;  %3716 = vmatpush3.bf16.msra.mxu1 %v3715_v36 }
 0x743   : > { %3729 = vmatprep.subr.bf16.mxu1 %v3841_v2 }
 0x7cf   : > { %v1769_v27 = vpop.xlane.xlu1 %1768 }
 0x7d0   : > { %v1771_v28 = vmul.f32 0.03125, %v1769_v27  ;;  %v3341_v27 = vld [vmem:[%s4440_s15] ss:$0 sm:$0xff] }
 0x7d2   : > { %v1772_v29 = vsub.f32 %v1764_v25, %v1771_v28  ;;  %v3340_v25 = vld [vmem:[%s4439_s14] ss:$0 sm:$0xff] }
 0x7d4   : > { %v1773_v30 = vmul.f32 %v1772_v29, %v1772_v29 }
 0x7d6   : > { %v1774_v31 = vsel %vm926_vm6, %v1773_v30, 0.0  ;;  %v3347_v30 = vld [vmem:[%s4430_s5 + $0x1] ss:$0 sm:$0xff] }
 0x7d7   : > { %1775 = vadd.xlane.f32.xlu0 %v1774_v31 }
 0x864   : > { %v1776_v47 = vpop.xlane.xlu0 %1775 }
 0x865   : > { %v1777_v48 = vmul.f32 0.03125, %v1776_v47 }
 0x867   : > { %v1778_v49 = vadd.f32 1e-05, %v1777_v48 }
 0x869   : > { %3807 = vrsqrt.f32 %v1778_v49 }
 0x873   : > { %v3808_v50 = vpop.eup %3807 }
 0x874   : > { %v1780_v52 = vmul.f32 %v3808_v50, %v1772_v29 }
 0x876   : > { %v1787_v54 = vmul.f32 %v3334_v51, %v1780_v52 }
 0x878   : > { %v1794_v55 = vadd.f32 %v3335_v53, %v1787_v54 }
 0x87a   : > { %3575 = vmatmul.mubr.msk.f32.vlgmr.msra.gmra.mrb[14].mxu1 %vm926_vm6, %v1794_v55 }
 0x87b   : > { %3604 = vmatprep.mubr.msk.f32.mxu1 %vm3842_vm0, %v3843_v4  ;;  %3731 = vmatpush3.bf16.msra.mxu1 %v3730_v16 }
 0x87c   : > { %3732 = vmatprep.subr.bf16.mxu1 %v3841_v2 }
 0x87f   : > { %3734 = vmatpush3.bf16.msra.mxu1 %v3733_v20 }
 0x880   : > { %3607 = vmatprep.subr.mxu1 %v3843_v4 }
 0x94d   : > { %v1875_v61 = vpop.f32.mrb[14].mxu1 }
 0x94e   : > { %v1876_v62 = vadd.f32 %v3336_v60, %v1875_v61  ;;  %v3576_v63 = vpop.f32.mrb[15].mxu1 }
 0x950   : > { %v1879_v0 = vmax.f32 %v1876_v62, 0.0 }
 0x952   : > { %3594 = vmatmul.mubr.msk.f32.vlgmr.msra.gmra.mrb[10].mxu0 %vm1895_vm9, %v1879_v0 }
 0x953   : > { %3619 = vmatprep.mubr.msk.f32.mxu0 %vm3842_vm0, %v3843_v4 }
 0xa25   : > { %v1965_v3 = vpop.f32.mrb[10].mxu0 }
 0xa26   : > { %v1966_v5 = vadd.f32 %v3338_v1, %v1965_v3  ;;  %v3595_v6 = vpop.f32.mrb[11].mxu0 }
 0xa28   : > { %v1969_v7 = vadd.f32 %v1966_v5, %v1794_v55 }
 0xa2a   : > { %v1972_v8 = vsel %vm926_vm6, %v1969_v7, 0.0 }
 0xa2b   : > { %1973 = vadd.xlane.f32.xlu0 %v1972_v8 }
 0xab8   : > { %v1974_v9 = vpop.xlane.xlu0 %1973 }
 0xab9   : > { %v1975_v10 = vmul.f32 0.03125, %v1974_v9 }
 0xabb   : > { %v1976_v11 = vsub.f32 %v1969_v7, %v1975_v10 }
 0xabd   : > { %v1977_v12 = vmul.f32 %v1976_v11, %v1976_v11 }
 0xabf   : > { %v1978_v13 = vsel %vm926_vm6, %v1977_v12, 0.0 }
 0xac0   : > { %1979 = vadd.xlane.f32.xlu1 %v1978_v13 }
 0xb4d   : > { %v1980_v21 = vpop.xlane.xlu1 %1979 }
 0xb4e   : > { %v1981_v22 = vmul.f32 0.03125, %v1980_v21 }
 0xb50   : > { %v1982_v23 = vadd.f32 1e-05, %v1981_v22 }
 0xb52   : > { %3809 = vrsqrt.f32 %v1982_v23 }
 0xb5c   : > { %v3810_v24 = vpop.eup %3809 }
 0xb5d   : > { %v1984_v26 = vmul.f32 %v3810_v24, %v1976_v11 }
 0xb5f   : > { %v1991_v28 = vmul.f32 %v3340_v25, %v1984_v26 }
 0xb61   : > { %v4218_v29 = vadd.f32 %v3341_v27, %v1991_v28 }
 0xb63   : > { %3605 = vmatmul.mubr.msk.f32.vlgmr.msra.gmra.mrb[16].mxu1 %vm926_vm6, %v4218_v29 }
 0xb64   : > { %3609 = vmatprep.mubr.msk.f32.mxu1 %vm3842_vm0, %v3843_v4 }
 0xc36   : > { %v2081_v31 = vpop.f32.mrb[16].mxu1 }
 0xc37   : > { %v4227_v32 = vadd.f32 %v3347_v30, %v2081_v31  ;;  %v3606_v33 = vpop.f32.mrb[17].mxu1 }
 0xc39   : > { %2252 = vrot.lane.b32.xlu1 %v4227_v32, %s3844_s26  ;;  %2086 = vrot.lane.b32.xlu0 %v4227_v32, %s3845_s27  ;;  %s4475_s26 = smov 64   ;;  %s4476_s27 = smov 48  }
 0xc3d   : > { %2250 = vrot.lane.b32.xlu1 %v4227_v32, %s4470_s25  ;;  %2418 = vrot.lane.b32.xlu0 %v4227_v32, %s4471_s29 }
 0xc41   : > { %2416 = vrot.lane.b32.xlu1 %v4227_v32, %s4472_s4  ;;  %2584 = vrot.lane.b32.xlu0 %v4227_v32, %s4473_s28 }
 0xc45   : > { %2582 = vrot.lane.b32.xlu1 %v4227_v32, %s4474_s30 }
 0xcab   : > { %v2253_v34 = vpop.permute.xlu1 %2252  ;;  %v2087_v57 = vpop.permute.xlu0 %2086 }
 0xcac   : > { %3608 = vmatpush3.xpose.msk.msra.mxu1 %vm1003_vm7, %v2087_v57  ;;  %3618 = vmatpush3.xpose.msk.msra.mxu0 %vm1003_vm7, %v2253_v34  ;;  %v3361_v34 = vld [vmem:[%s4431_s6 + $0x20] sm:$0xff]  ;;  %v3362_v57 = vld [vmem:[%s4431_s6 + $0x28] sm:$0xff] }
 0xcad   : > { %3627 = vmatprep.subr.mxu0 %v3843_v4  ;;  %3612 = vmatprep.subr.mxu1 %v3843_v4 }
 0xcaf   : > { %v2251_v35 = vpop.permute.xlu1 %2250  ;;  %3610 = vmatmul.mubr.msk.f32.vlgmr.msra.gmra.mrb[18].mxu1 %vm1003_vm7, %v4227_v32  ;;  %v2419_v36 = vpop.permute.xlu0 %2418 }
 0xcb0   : > { %3620 = vmatmul.mubr.msk.f32.vlgmr.msra.gmra.mrb[12].mxu0 %vm1003_vm7, %v2251_v35  ;;  %3614 = vmatprep.mubr.msk.f32.mxu1 %vm3842_vm0, %v3843_v4  ;;  %v3736_v35 = vpack.c.bf16 %v3362_v57, %v3361_v34 }
 0xcb1   : > { %3628 = vmatpush3.xpose.msk.msra.mxu0 %vm1003_vm7, %v2419_v36  ;;  %3629 = vmatprep.mubr.msk.f32.mxu0 %vm3842_vm0, %v3843_v4  ;;  %v3363_v36 = vld [vmem:[%s4431_s6 + $0x30] sm:$0xff] }
 0xcb2   : > { %3637 = vmatprep.subr.mxu0 %v3843_v4 }
 0xcb3   : > { %v2417_v37 = vpop.permute.xlu1 %2416  ;;  %v2585_v39 = vpop.permute.xlu0 %2584 }
 0xcb4   : > { %3630 = vmatmul.mubr.msk.f32.vlgmr.msra.gmra.mrb[14].mxu0 %vm1003_vm7, %v2417_v37  ;;  %v3364_v37 = vld [vmem:[%s4431_s6 + $0x38] sm:$0xff] }
 0xcb5   : > { %3638 = vmatpush3.xpose.msk.msra.mxu0 %vm1003_vm7, %v2585_v39  ;;  %3639 = vmatprep.mubr.msk.f32.mxu0 %vm3842_vm0, %v3843_v4  ;;  %v3739_v39 = vpack.c.bf16 %v3364_v37, %v3363_v36 }
 0xcb6   : > { %3735 = vmatprep.subr.bf16.mxu0 %v3841_v2 }
 0xcb7   : > { %v2583_v40 = vpop.permute.xlu1 %2582 }
 0xcb8   : > { %3640 = vmatmul.mubr.msk.f32.vlgmr.msra.gmra.mrb[16].mxu0 %vm1003_vm7, %v2583_v40 }
 0xcb9   : > { %3655 = vmatprep.mubr.msk.f32.mxu0 %vm3842_vm0, %v3843_v4  ;;  %3737 = vmatpush3.bf16.msra.mxu0 %v3736_v35 }
 0xcba   : > { %3738 = vmatprep.subr.bf16.mxu0 %v3841_v2 }
 0xcbd   : > { %3740 = vmatpush3.bf16.msra.mxu0 %v3739_v39 }
 0xcbe   : > { %3747 = vmatprep.subr.bf16.mxu0 %v3841_v2 }
 0xd82   : > { %v2158_v41 = vpop.f32.mrb[18].mxu1 }
 0xd83   : > { %v2162_v42 = vmul.f32 0.35355338, %v2158_v41  ;;  %v3611_v43 = vpop.f32.mrb[19].mxu1  ;;  %v2324_v44 = vpop.f32.mrb[12].mxu0 }
 0xd84   : > { %v2328_v45 = vmul.f32 0.35355338, %v2324_v44  ;;  %v3621_v46 = vpop.f32.mrb[13].mxu0 }
 0xd85   : > { %v2163_v47 = vsel %vm1003_vm7, %v2162_v42, -inf }
 0xd86   : > { %2164 = vmax.xlane.f32.xlu0 %v2163_v47  ;;  %v2329_v48 = vsel %vm1003_vm7, %v2328_v45, -inf }
 0xd87   : > { %2330 = vmax.xlane.f32.xlu1 %v2329_v48  ;;  %v2490_v49 = vpop.f32.mrb[14].mxu0 }
 0xd88   : > { %v2494_v50 = vmul.f32 0.35355338, %v2490_v49  ;;  %v3631_v51 = vpop.f32.mrb[15].mxu0 }
 0xd8a   : > { %v2495_v52 = vsel %vm1003_vm7, %v2494_v50, -inf }
 0xd8b   : > { %v2656_v53 = vpop.f32.mrb[16].mxu0  ;;  %2496 = vmax.xlane.f32.xlu0 %v2495_v52 }
 0xd8c   : > { %v2660_v54 = vmul.f32 0.35355338, %v2656_v53  ;;  %v3641_v55 = vpop.f32.mrb[17].mxu0 }
 0xd8e   : > { %v2661_v56 = vsel %vm1003_vm7, %v2660_v54, -inf }
 0xd8f   : > { %2662 = vmax.xlane.f32.xlu0 %v2661_v56 }
 0xd98   : > { %2174 = vrot.lane.b32.xlu1 %v4227_v32, %s4475_s26 }
 0xe13   : > { %v2165_v58 = vpop.xlane.xlu0 %2164 }
 0xe14   : > { %v2166_v59 = vsub.f32 %v2162_v42, %v2165_v58  ;;  %v2331_v60 = vpop.xlane.xlu1 %2330 }
 0xe15   : > { %v2332_v61 = vsub.f32 %v2328_v45, %v2331_v60 }
 0xe16   : > { %v2167_v62 = vmul.f32 1.442695, %v2166_v59 }
 0xe17   : > { %v2333_v63 = vmul.f32 1.442695, %v2332_v61 }
 0xe18   : > { %3811 = vpow2.f32 %v2167_v62  ;;  %v2175_v0 = vpop.permute.xlu1 %2174  ;;  %v2497_v1 = vpop.xlane.xlu0 %2496 }
 0xe19   : > { %3813 = vpow2.f32 %v2333_v63  ;;  %v2498_v3 = vsub.f32 %v2494_v50, %v2497_v1  ;;  %3613 = vmatpush3.msra.mxu1 %v2175_v0 }
 0xe1a   : > { %3622 = vmatprep.subr.mxu1 %v3843_v4 }
 0xe1b   : > { %v2499_v5 = vmul.f32 1.442695, %v2498_v3  ;;  %v3372_v3 = vld [vmem:[%s4435_s10 + $0x20] sm:$0xff] }
 0xe1c   : > { %v2663_v6 = vpop.xlane.xlu0 %2662 }
 0xe1d   : > { %3815 = vpow2.f32 %v2499_v5  ;;  %v2664_v7 = vsub.f32 %v2660_v54, %v2663_v6  ;;  %v3366_v54 = vld [vmem:[%s4432_s7 + $0x1] ss:$0 sm:$0xff]  ;;  %v3373_v5 = vld [vmem:[%s4435_s10 + $0x28] sm:$0xff] }
 0xe1e   : > { %v3742_v6 = vpack.c.bf16 %v3373_v5, %v3372_v3  ;;  %v3123_v3 = vld [vmem:[%s4444_s19] sm:$0xff]  ;;  %v3858_v5 = vmov 0  }
 0xe1f   : > { %v2665_v8 = vmul.f32 1.442695, %v2664_v7  ;;  %v3375_v7 = vld [vmem:[%s4435_s10 + $0x38] sm:$0xff]  ;;  %3785 = vset.pattern.permute.xlu1 %v3858_v5 }
 0xe21   : > { %3817 = vpow2.f32 %v2665_v8 }
 0xe22   : > { %v3812_v9 = vpop.eup %3811 }
 0xe23   : > { %v3814_v10 = vpop.eup %3813  ;;  %v2169_v11 = vsel %vm1003_vm7, %v3812_v9, 0.0 }
 0xe24   : > { %2170 = vadd.xlane.f32.xlu1 %v2169_v11  ;;  %v2335_v12 = vsel %vm1003_vm7, %v3814_v10, 0.0  ;;  %v3381_v11 = vld [vmem:[%s4437_s12 + $0x50] sm:$0xff] }
 0xe25   : > { %2336 = vadd.xlane.f32.xlu0 %v2335_v12 }
 0xe27   : > { %v3816_v13 = vpop.eup %3815 }
 0xe28   : > { %v2501_v14 = vsel %vm1003_vm7, %v3816_v13, 0.0 }
 0xe29   : > { %2502 = vadd.xlane.f32.xlu1 %v2501_v14 }
 0xe2b   : > { %v3818_v15 = vpop.eup %3817 }
 0xe2c   : > { %v2667_v16 = vsel %vm1003_vm7, %v3818_v15, 0.0 }
 0xe2d   : > { %2668 = vadd.xlane.f32.xlu0 %v2667_v16  ;;  %v3384_v16 = vld [vmem:[%s4437_s12 + $0x68] sm:$0xff] }
 0xe3a   : > { %2506 = vrot.lane.b32.xlu1 %v4227_v32, %s4476_s27  ;;  %s4479_s27 = smov 8  }
 0xe3e   : > { %2672 = vrot.lane.b32.xlu1 %v4227_v32, %s4477_s21  ;;  %s4480_s21 = smov 16  }
 0xe43   : > { %2340 = vrot.lane.b32.xlu0 %v4227_v32, %s4478_s23  ;;  %s4481_s23 = smov 24  }
 0xeb1   : > { %v2171_v17 = vpop.xlane.xlu1 %2170 }
 0xeb2   : > { %3819 = vrcp.f32 %v2171_v17  ;;  %v2337_v19 = vpop.xlane.xlu0 %2336 }
 0xeb3   : > { %3821 = vrcp.f32 %v2337_v19 }
 0xeb6   : > { %v2503_v20 = vpop.xlane.xlu1 %2502 }
 0xeb7   : > { %3823 = vrcp.f32 %v2503_v20 }
 0xeba   : > { %v2669_v21 = vpop.xlane.xlu0 %2668  ;;  %v2507_v27 = vpop.permute.xlu1 %2506 }
 0xebb   : > { %3825 = vrcp.f32 %v2669_v21 }
 0xebc   : > { %v3820_v22 = vpop.eup %3819 }
 0xebd   : > { %v2173_v23 = vmul.f32 %v3820_v22, %v3812_v9  ;;  %v3822_v24 = vpop.eup %3821  ;;  %v3379_v9 = vld [vmem:[%s4437_s12 + $0x40] sm:$0xff] }
 0xebe   : > { %v2341_v25 = vpop.permute.xlu0 %2340  ;;  %v2339_v26 = vmul.f32 %v3822_v24, %v3814_v10  ;;  %v2673_v32 = vpop.permute.xlu1 %2672  ;;  %v3380_v10 = vld [vmem:[%s4437_s12 + $0x48] sm:$0xff] }
 0xebf   : > { %3615 = vmatmul.mubr.msk.f32.vlgmr.msra.gmra.mrb[20].mxu1 %vm1003_vm7, %v2173_v23  ;;  %v3748_v12 = vpack.c.bf16 %v3380_v10, %v3379_v9  ;;  %v3370_v23 = vld [vmem:[%s4433_s8 + $0x1] ss:$0 sm:$0xff]  ;;  %v3394_v9 = vld [vmem:[%s4441_s16] ss:$0 sm:$0xff] }
 0xec0   : > { %3623 = vmatpush3.msra.mxu1 %v2341_v25  ;;  %3624 = vmatprep.mubr.msk.f32.mxu1 %vm3842_vm0, %v3843_v4  ;;  %v3371_v25 = vld [vmem:[%s4434_s9 + $0x1] ss:$0 sm:$0xff] }
 0xec1   : > { %3632 = vmatprep.subr.mxu1 %v3843_v4  ;;  %v3824_v28 = vpop.eup %3823 }
 0xec2   : > { %v2505_v30 = vmul.f32 %v3824_v28, %v3816_v13  ;;  %v3382_v13 = vld [vmem:[%s4437_s12 + $0x58] sm:$0xff] }
 0xec3   : > { %3625 = vmatmul.mubr.msk.f32.vlgmr.msra.gmra.mrb[22].mxu1 %vm1003_vm7, %v2339_v26  ;;  %v3751_v14 = vpack.c.bf16 %v3382_v13, %v3381_v11  ;;  %v3386_v28 = vld [vmem:[%s4437_s12 + $0x78] sm:$0xff]  ;;  %v3395_v11 = vld [vmem:[%s4442_s17] ss:$0 sm:$0xff] }
 0xec4   : > { %3633 = vmatpush3.msra.mxu1 %v2507_v27  ;;  %3634 = vmatprep.mubr.msk.f32.mxu1 %vm3842_vm0, %v3843_v4 }
 0xec5   : > { %3642 = vmatprep.subr.mxu1 %v3843_v4  ;;  %v3826_v31 = vpop.eup %3825 }
 0xec6   : > { %v2671_v33 = vmul.f32 %v3826_v31, %v3818_v15  ;;  %v3383_v15 = vld [vmem:[%s4437_s12 + $0x60] sm:$0xff] }
 0xec7   : > { %3635 = vmatmul.mubr.msk.f32.vlgmr.msra.gmra.mrb[24].mxu1 %vm1003_vm7, %v2505_v30  ;;  %v3754_v17 = vpack.c.bf16 %v3384_v16, %v3383_v15  ;;  %v3377_v31 = vld [vmem:[%s4436_s11 + $0x1] ss:$0 sm:$0xff] }
 0xec8   : > { %3643 = vmatpush3.msra.mxu1 %v2673_v32  ;;  %3644 = vmatprep.mubr.msk.f32.mxu1 %vm3842_vm0, %v3843_v4 }
 0xec9   : > { %3741 = vmatprep.subr.bf16.mxu1 %v3841_v2 }
 0xecb   : > { %3645 = vmatmul.mubr.msk.f32.vlgmr.msra.gmra.mrb[26].mxu1 %vm1003_vm7, %v2671_v33 }
 0xecc   : > { %3666 = vmatprep.mubr.msk.f32.mxu1 %vm3842_vm0, %v3843_v4  ;;  %3743 = vmatpush3.bf16.msra.mxu1 %v3742_v6 }
 0xecd   : > { %3744 = vmatprep.subr.bf16.mxu1 %v3841_v2 }
 0xf92   : > { %v2246_v40 = vpop.f32.mrb[20].mxu1 }
 0xf93   : > { %v3616_v41 = vpop.f32.mrb[21].mxu1 }
 0xf96   : > { %v2412_v42 = vpop.f32.mrb[22].mxu1 }
 0xf97   : > { %2749 = vrot.lane.b32.xlu0 %v2412_v42, %s4479_s27  ;;  %v3626_v43 = vpop.f32.mrb[23].mxu1  ;;  %s3314_s27 = sshll.u32 %s4483_s22, 3 }
 0xf98   : > { %s647_s0 = scalar_lea.vmem %s4445_s20, %s3314_s27 }
 0xf9a   : > { %v2578_v44 = vpop.f32.mrb[24].mxu1 }
 0xf9b   : > { %2753 = vrot.lane.b32.xlu1 %v2578_v44, %s4480_s21  ;;  %v3636_v45 = vpop.f32.mrb[25].mxu1 }
 0xf9e   : > { %v2744_v46 = vpop.f32.mrb[26].mxu1 }
 0xf9f   : > { %2757 = vrot.lane.b32.xlu0 %v2744_v46, %s4481_s23  ;;  %v3646_v47 = vpop.f32.mrb[27].mxu1 }
0x1009   : > { %v2750_v48 = vpop.permute.xlu0 %2749 }
0x100a   : > { %v2760_v50 = vsel %vm1003_vm7, %v2246_v40, %v2750_v48 }
0x100d   : > { %v2754_v49 = vpop.permute.xlu1 %2753 }
0x100e   : > { %v2761_v51 = vsel %vm721_vm4, %v2760_v50, %v2754_v49  ;;  %v3392_v50 = vld [vmem:[%s4439_s14 + $0x1] ss:$0 sm:$0xff] }
0x1011   : > { %v2758_v52 = vpop.permute.xlu0 %2757 }
0x1012   : > { %v2762_v53 = vsel %vm1678_vm8, %v2761_v51, %v2758_v52  ;;  %v3393_v52 = vld [vmem:[%s4440_s15 + $0x1] ss:$0 sm:$0xff] }
0x1013   : > { %3656 = vmatmul.mubr.msk.f32.vlgmr.msra.gmra.mrb[18].mxu0 %vm926_vm6, %v2762_v53 }
0x1014   : > { %3685 = vmatprep.mubr.msk.f32.mxu0 %vm3842_vm0, %v3843_v4  ;;  %3749 = vmatpush3.bf16.msra.mxu0 %v3748_v12 }
0x1015   : > { %3750 = vmatprep.subr.bf16.mxu0 %v3841_v2 }
0x1018   : > { %3752 = vmatpush3.bf16.msra.mxu0 %v3751_v14 }
0x1019   : > { %3753 = vmatprep.subr.bf16.mxu0 %v3841_v2 }
0x101c   : > { %3755 = vmatpush3.bf16.msra.mxu0 %v3754_v17 }
0x101d   : > { %3756 = vmatprep.subr.bf16.mxu0 %v3841_v2  ;;  %v3385_v2 = vld [vmem:[%s4437_s12 + $0x70] sm:$0xff] }
0x101e   : > { %v3757_v30 = vpack.c.bf16 %v3386_v28, %v3385_v2 }
0x1020   : > { %3758 = vmatpush3.bf16.msra.mxu0 %v3757_v30 }
0x10e6   : > { %v2845_v55 = vpop.f32.mrb[18].mxu0 }
0x10e7   : > { %v2846_v56 = vadd.f32 %v3366_v54, %v2845_v55  ;;  %v3657_v58 = vpop.f32.mrb[19].mxu0 }
0x10e8   : > { %v3120_v58 = vld [vmem:[%s4443_s18 + $0x8] sm:$0xff] }
0x10e9   : > { %v2849_v59 = vadd.f32 %v2846_v56, %v4218_v29  ;;  %v3374_v29 = vld [vmem:[%s4435_s10 + $0x30] sm:$0xff]  ;;  %v3119_v56 = vld [vmem:[%s4443_s18] sm:$0xff] }
0x10ea   : > { %v3745_v8 = vpack.c.bf16 %v3375_v7, %v3374_v29 }
0x10eb   : > { %v2854_v60 = vsel %vm926_vm6, %v2849_v59, 0.0 }
0x10ec   : > { %2855 = vadd.xlane.f32.xlu1 %v2854_v60  ;;  %3746 = vmatpush3.bf16.msra.mxu1 %v3745_v8  ;;  %v3122_v60 = vld [vmem:[%s4443_s18 + $0x18] sm:$0xff] }
0x10ed   : > { %3688 = vmatprep.subr.mxu1 %v3843_v4 }
0x1179   : > { %v2856_v61 = vpop.xlane.xlu1 %2855 }
0x117a   : > { %v2857_v62 = vmul.f32 0.03125, %v2856_v61 }
0x117c   : > { %v2858_v63 = vsub.f32 %v2849_v59, %v2857_v62  ;;  %v3121_v59 = vld [vmem:[%s4443_s18 + $0x10] sm:$0xff] }
0x117e   : > { %v2859_v0 = vmul.f32 %v2858_v63, %v2858_v63 }
0x1180   : > { %v2860_v1 = vsel %vm926_vm6, %v2859_v0, 0.0 }
0x1181   : > { %2861 = vadd.xlane.f32.xlu0 %v2860_v1 }
0x120e   : > { %v2862_v19 = vpop.xlane.xlu0 %2861 }
0x120f   : > { %v2863_v20 = vmul.f32 0.03125, %v2862_v19 }
0x1211   : > { %v2864_v21 = vadd.f32 1e-05, %v2863_v20 }
0x1213   : > { %3827 = vrsqrt.f32 %v2864_v21 }
0x121d   : > { %v3828_v22 = vpop.eup %3827 }
0x121e   : > { %v2866_v24 = vmul.f32 %v3828_v22, %v2858_v63 }
0x1220   : > { %v2873_v26 = vmul.f32 %v3370_v23, %v2866_v24 }
0x1222   : > { %v2880_v27 = vadd.f32 %v3371_v25, %v2873_v26 }
0x1224   : > { %3667 = vmatmul.mubr.msk.f32.vlgmr.msra.gmra.mrb[28].mxu1 %vm926_vm6, %v2880_v27 }
0x1225   : > { %3690 = vmatprep.mubr.msk.f32.mxu1 %vm3842_vm0, %v3843_v4  ;;  %v3388_v4 = vld [vmem:[%s4438_s13 + $0x1] ss:$0 sm:$0xff] }
0x12f7   : > { %v2963_v32 = vpop.f32.mrb[28].mxu1 }
0x12f8   : > { %v2964_v33 = vadd.f32 %v3377_v31, %v2963_v32  ;;  %v3668_v34 = vpop.f32.mrb[29].mxu1 }
0x12fa   : > { %v2967_v57 = vmax.f32 %v2964_v33, 0.0 }
0x12fc   : > { %3686 = vmatmul.mubr.msk.f32.vlgmr.msra.gmra.mrb[20].mxu0 %vm1895_vm9, %v2967_v57 }
0x13cf   : > { %v3054_v35 = vpop.f32.mrb[20].mxu0 }
0x13d0   : > { %v3055_v36 = vadd.f32 %v3388_v4, %v3054_v35  ;;  %v3687_v37 = vpop.f32.mrb[21].mxu0 }
0x13d2   : > { %v3058_v39 = vadd.f32 %v3055_v36, %v2880_v27 }
0x13d4   : > { %v3063_v40 = vsel %vm926_vm6, %v3058_v39, 0.0 }
0x13d5   : > { %3064 = vadd.xlane.f32.xlu0 %v3063_v40 }
0x1462   : > { %v3065_v41 = vpop.xlane.xlu0 %3064 }
0x1463   : > { %v3066_v42 = vmul.f32 0.03125, %v3065_v41 }
0x1465   : > { %v3067_v43 = vsub.f32 %v3058_v39, %v3066_v42 }
0x1467   : > { %v3068_v44 = vmul.f32 %v3067_v43, %v3067_v43 }
0x1469   : > { %v3069_v45 = vsel %vm926_vm6, %v3068_v44, 0.0 }
0x146a   : > { %3070 = vadd.xlane.f32.xlu1 %v3069_v45 }
0x14f7   : > { %v3071_v46 = vpop.xlane.xlu1 %3070 }
0x14f8   : > { %v3072_v47 = vmul.f32 0.03125, %v3071_v46 }
0x14fa   : > { %v3073_v48 = vadd.f32 1e-05, %v3072_v47 }
0x14fc   : > { %3829 = vrsqrt.f32 %v3073_v48 }
0x1506   : > { %v3830_v49 = vpop.eup %3829 }
0x1507   : > { %v3075_v51 = vmul.f32 %v3830_v49, %v3067_v43 }
0x1509   : > { %v3082_v53 = vmul.f32 %v3392_v50, %v3075_v51 }
0x150b   : > { %v3089_v54 = vadd.f32 %v3393_v52, %v3082_v53 }
0x150d   : > { %v3092_v55 = vsel %vm926_vm6, %v3089_v54, 0.0 }
0x150e   : > { %3093 = vadd.xlane.f32.xlu0 %v3092_v55 }
0x153b   : > { %3129 = vxpose.xlu0.b32.start [1/4] (short) (narrow) %v3119_v56, 8 }
0x153f   : > { %3130 = vxpose.xlu0.b32.cont [2/4] (short) (narrow) %v3120_v58, 8 }
0x1543   : > { %3131 = vxpose.xlu0.b32.cont [3/4] (short) (narrow) %v3121_v59, 8 }
0x1547   : > { %3132 = vxpose.xlu0.b32.end [4/4] (short) (narrow) %v3122_v60, 8 }
0x1570   : > { %3786 = vset.pattern.permute.xlu0 %v3858_v5 }
0x159b   : > { %v3094_v61 = vpop.xlane.xlu0 %3093 }
0x159c   : > { %v3095_v62 = vmul.f32 0.03125, %v3094_v61 }
0x159e   : > { %v3096_v63 = vsub.f32 %v3089_v54, %v3095_v62 }
0x15a0   : > { %v3097_v0 = vmul.f32 %v3096_v63, %v3096_v63 }
0x15a2   : > { %v3098_v1 = vsel %vm926_vm6, %v3097_v0, 0.0 }
0x15a3   : > { %3099 = vadd.xlane.f32.xlu1 %v3098_v1 }
0x15b4   : > { %3126 = vperm.xlu1 %3785, %v3123_v3  }
0x15bb   : > { %v3145_v14 = vpop.trf.xlu0 }
0x1630   : > { %v3100_v6 = vpop.xlane.xlu1 %3099 }
0x1631   : > { %v3101_v29 = vmul.f32 0.03125, %v3100_v6 }
0x1633   : > { %v3102_v7 = vadd.f32 1e-05, %v3101_v29 }
0x1634   : > { %v3127_v15 = vpop.permute.xlu1 %3126 }
0x1635   : > { %3831 = vrsqrt.f32 %v3102_v7 }
0x163f   : > { %v3832_v8 = vpop.eup %3831 }
0x1640   : > { %v3104_v10 = vmul.f32 %v3832_v8, %v3096_v63 }
0x1642   : > { %v3111_v12 = vmul.f32 %v3394_v9, %v3104_v10 }
0x1644   : > { %v3118_v13 = vadd.f32 %v3395_v11, %v3111_v12 }
0x1646   : > { %3689 = vmatpush3.xpose.msk.msra.mxu1 %vm926_vm6, %v3118_v13 }
0x1649   : > { %3691 = vmatmul.mubr.msk.f32.vlgmr.msra.gmra.mrb[30].mxu1 %vm926_vm6, %v3145_v14 }
0x171c   : > { %v3233_v16 = vpop.f32.mrb[30].mxu1 }
0x171d   : > { %v3234_v17 = vadd.f32 %v3233_v16, %v3127_v15  ;;  %v3692_v19 = vpop.f32.mrb[31].mxu1 }
0x171f   : > { %v3237_v20 = vmul.f32 %v3234_v17, %v4002_v38 }
0x1721   : > { %v3238_v21 = vadd.f32 %v3237_v20, %v3996_v18 }
0x1723   : > { %3239 = vst.msk [vmem:[%s647_s0] sm:$0xff] %vm650_vm1, %v3238_v21 }
0x1724 PF: > { %s30_s1 = sadd.s32 1, %s3839_s1  }
0x1725   : > { %p27_p4 = scmp.ge.s32.totalorder %s30_s1, 4  }
0x1727   :  { %29 = sbr.rel (!%p27_p4) target bundleno = 6 (0x6), region = 145 }

</bundles_post_ra>
